<compile_context>
chip_gen: v7x
topology: tpu7x:2x2x1
jax: 0.10.0
libtpu: 0.0.40
codegen_flags: <defaults>
</compile_context>

<pallas_src>
import functools
import math

import jax
import jax.numpy as jnp
from jax import lax
from jax.experimental import pallas as pl
from jax.experimental.pallas import tpu as pltpu

_LOG_2PI = math.log(2.0 * math.pi)


# ----------------------------- in-kernel helpers ------------------------------

def _softplus(x):
    # Numerically stable log(1 + exp(x)) (matches torch.log(1 + torch.exp(x))).
    return jnp.maximum(x, 0.0) + jnp.log(1.0 + jnp.exp(-jnp.abs(x)))


# ----------------------------- Pallas kernels ---------------------------------

def _bayes_mlp_sampled_kernel(xc_ref,
                              w1mu_ref, w1rho_ref, w1eps_ref,
                              w2mu_ref, w2rho_ref, w2eps_ref,
                              w3mu_ref, w3rho_ref, w3eps_ref,
                              b1_ref, b2_ref, b3_ref,
                              o_ref, kl_ref, *, prior_sigma):
    """Fused reparameterization sampling + KL reductions + 3-layer MLP.

    xc_ref:  (n_chunks, B, CK)   input, pre-chunked over the K dim
    w1*_ref: (n_chunks, CK, H)   layer-1 mu / rho / eps, chunked over K
    w2*_ref: (H, H), w3*_ref: (H, n_out)
    b*_ref:  (3, n) rows = [mu, rho, eps]
    o_ref:   (B, n_out) softmax probs;  kl_ref: (1, 2) = [variational, prior]
    """
    n_chunks, ck, h = w1mu_ref.shape
    batch = xc_ref.shape[1]
    n_out = w3mu_ref.shape[1]

    def sample_stats(mu, rho, eps):
        # w = mu + softplus(rho) * eps, eps drawn ~ N(0, prior_sigma) host-side.
        # Strength-reduced per-element KL terms (constants folded in later):
        #   log q(w|mu,sigma): -0.5*log(2pi) - log(sigma) - 0.5*eps^2
        #                      ((w - mu)/sigma == eps by construction)
        #   log p(w):          -0.5*log(2pi) - log(ps) - w^2 / (2*ps^2)
        sigma = _softplus(rho)
        w = mu + sigma * eps
        return (w,
                jnp.sum(jnp.log(sigma), keepdims=True),
                jnp.sum(eps * eps, keepdims=True),
                jnp.sum(w * w, keepdims=True))

    # ---- layer 1: sample W1 chunk-by-chunk, fused with the K-loop matmul ----
    def l1_body(i, carry):
        acc, s_log, s_eps2, s_w2 = carry
        w, a, b, c = sample_stats(w1mu_ref[i], w1rho_ref[i], w1eps_ref[i])
        acc = acc + jnp.dot(xc_ref[i], w, preferred_element_type=jnp.float32)
        return acc, s_log + a, s_eps2 + b, s_w2 + c

    z11 = jnp.zeros((1, 1), jnp.float32)
    acc1, s_log, s_eps2, s_w2 = lax.fori_loop(
        0, n_chunks, l1_body,
        (jnp.zeros((batch, h), jnp.float32), z11, z11, z11))

    def sample_bias(bref):
        return sample_stats(bref[0:1, :], bref[1:2, :], bref[2:3, :])

    b1, a, b, c = sample_bias(b1_ref)
    s_log, s_eps2, s_w2 = s_log + a, s_eps2 + b, s_w2 + c
    h1 = jnp.maximum(acc1 + b1, 0.0)

    # ---- layer 2 (small, sampled whole) ----
    w2, a, b, c = sample_stats(w2mu_ref[...], w2rho_ref[...], w2eps_ref[...])
    s_log, s_eps2, s_w2 = s_log + a, s_eps2 + b, s_w2 + c
    b2, a, b, c = sample_bias(b2_ref)
    s_log, s_eps2, s_w2 = s_log + a, s_eps2 + b, s_w2 + c
    h2 = jnp.maximum(jnp.dot(h1, w2, preferred_element_type=jnp.float32) + b2, 0.0)

    # ---- layer 3 ----
    w3, a, b, c = sample_stats(w3mu_ref[...], w3rho_ref[...], w3eps_ref[...])
    s_log, s_eps2, s_w2 = s_log + a, s_eps2 + b, s_w2 + c
    b3, a, b, c = sample_bias(b3_ref)
    s_log, s_eps2, s_w2 = s_log + a, s_eps2 + b, s_w2 + c
    logits = jnp.dot(h2, w3, preferred_element_type=jnp.float32) + b3

    # numerically stable softmax over dim=1.
    m = jnp.max(logits, axis=1, keepdims=True)
    e = jnp.exp(logits - m)
    o_ref[...] = (e / jnp.sum(e, axis=1, keepdims=True)).astype(o_ref.dtype)

    # ---- fold hoisted constants back in; single (1,2) KL output ----
    n_total = n_chunks * ck * h + h + h * h + h + h * n_out + n_out
    c_var = float(n_total) * (-0.5 * _LOG_2PI)
    c_pri = float(n_total) * (-0.5 * _LOG_2PI - math.log(prior_sigma))
    inv2ps2 = 0.5 / (prior_sigma * prior_sigma)
    kl_ref[:, 0:1] = (c_var - s_log - 0.5 * s_eps2).astype(kl_ref.dtype)
    kl_ref[:, 1:2] = (c_pri - inv2ps2 * s_w2).astype(kl_ref.dtype)


def _bayes_mlp_fixed_kernel(x_ref, w1_ref, b1_ref, w2_ref, b2_ref,
                            w3_ref, b3_ref, o_ref):
    """fix_weights=True path: use the variational means directly."""
    h1 = jnp.maximum(
        jnp.dot(x_ref[...], w1_ref[...], preferred_element_type=jnp.float32)
        + b1_ref[...], 0.0)
    h2 = jnp.maximum(
        jnp.dot(h1, w2_ref[...], preferred_element_type=jnp.float32)
        + b2_ref[...], 0.0)
    logits = (jnp.dot(h2, w3_ref[...], preferred_element_type=jnp.float32)
              + b3_ref[...])
    m = jnp.max(logits, axis=1, keepdims=True)
    e = jnp.exp(logits - m)
    o_ref[...] = (e / jnp.sum(e, axis=1, keepdims=True)).astype(o_ref.dtype)


# ----------------------------- wrappers ---------------------------------------

def _cost_estimate(B, n_in, h, n_out, sampled):
    n_params = n_in * h + h * h + h * n_out + 2 * h + n_out
    matmul_flops = 2 * B * (n_in * h + h * h + h * n_out)
    flops = matmul_flops + 4 * B * n_out + (8 * n_params if sampled else 0)
    # per sampled param: softplus (exp + log) + log(sigma) ~ 3; plus softmax exp.
    transcendentals = B * n_out + (3 * n_params if sampled else 0)
    bytes_accessed = (4 * (B * n_in + B * n_out + 2)
                      + 4 * n_params * (3 if sampled else 1))
    return pl.CostEstimate(flops=flops, transcendentals=transcendentals,
                           bytes_accessed=bytes_accessed)


def _draw_eps(key, params, prior_sigma):
    """eps ~ N(0, prior_sigma) for every W / b, as in BayesFCLayer.sample_weights."""
    eps = {}
    keys = jax.random.split(key, 6)
    for i, l in enumerate(("l1", "l2", "l3")):
        eps[l] = {
            "W": prior_sigma * jax.random.normal(
                keys[2 * i], params[l]["W_mu"].shape, jnp.float32),
            "b": prior_sigma * jax.random.normal(
                keys[2 * i + 1], params[l]["b_mu"].shape, jnp.float32),
        }
    return eps


@functools.partial(jax.jit, static_argnames=("prior_sigma", "fix_weights"))
def bayes_mlp_forward(x, params, key, prior_sigma, fix_weights=False):
    """Forward pass of BayesMLP.

    Returns (softmax probs (B, n_output), (variational_loss, prior_loss)).
    """
    B = x.shape[0]
    xf = x.reshape(B, -1).astype(jnp.float32)        # X.view(X.size(0), -1)
    n_in = xf.shape[1]
    h = params["l1"]["W_mu"].shape[1]
    n_out = params["l3"]["W_mu"].shape[1]

    vmem = pl.BlockSpec(memory_space=pltpu.MemorySpace.VMEM)

    if fix_weights:
        out = pl.pallas_call(
            _bayes_mlp_fixed_kernel,
            out_shape=jax.ShapeDtypeStruct((B, n_out), jnp.float32),
            in_specs=[vmem] * 7,
            out_specs=vmem,
            cost_estimate=_cost_estimate(B, n_in, h, n_out, sampled=False),
        )(xf,
          params["l1"]["W_mu"], params["l1"]["b_mu"].reshape(1, -1),
          params["l2"]["W_mu"], params["l2"]["b_mu"].reshape(1, -1),
          params["l3"]["W_mu"], params["l3"]["b_mu"].reshape(1, -1))
        zero = jnp.float32(0.0)
        return out, (zero, zero)

    eps = _draw_eps(key, params, prior_sigma)

    # Chunk layer 1 over its K (= n_input) dimension so the kernel never holds
    # the full sampled W1 live.  Leading-axis dynamic indexing only (robust).
    if n_in % 256 == 0:
        ck = 256
    elif n_in % 128 == 0:
        ck = 128
    else:
        ck = n_in
    n_chunks = n_in // ck
    xc = xf.reshape(B, n_chunks, ck).transpose(1, 0, 2)          # (n_chunks, B, ck)

    def chunk_w1(w):
        return w.reshape(n_chunks, ck, h)

    # Stack [mu, rho, eps] per bias into one (3, n) input -> fewer DMAs.
    bpack = [jnp.stack([params[l]["b_mu"], params[l]["b_rho"], eps[l]["b"]], axis=0)
             for l in ("l1", "l2", "l3")]

    kernel = functools.partial(_bayes_mlp_sampled_kernel,
                               prior_sigma=float(prior_sigma))
    out, kl = pl.pallas_call(
        kernel,
        out_shape=(jax.ShapeDtypeStruct((B, n_out), jnp.float32),
                   jax.ShapeDtypeStruct((1, 2), jnp.float32)),
        in_specs=[vmem] * 13,
        out_specs=(vmem, vmem),
        cost_estimate=_cost_estimate(B, n_in, h, n_out, sampled=True),
    )(xc,
      chunk_w1(params["l1"]["W_mu"]), chunk_w1(params["l1"]["W_rho"]),
      chunk_w1(eps["l1"]["W"]),
      params["l2"]["W_mu"], params["l2"]["W_rho"], eps["l2"]["W"],
      params["l3"]["W_mu"], params["l3"]["W_rho"], eps["l3"]["W"],
      bpack[0], bpack[1], bpack[2])
    return out, (kl[0, 0], kl[0, 1])


# ----------------------------- init + references ------------------------------

def init_bayes_mlp_params(key, n_input, n_output, num_hidden_units, prior_sigma):
    """Deterministic synthetic init mirroring the PyTorch __init__ shapes."""
    dims = [(n_input, num_hidden_units),
            (num_hidden_units, num_hidden_units),
            (num_hidden_units, n_output)]
    params = {}
    keys = jax.random.split(key, 4 * len(dims))
    for i, (d_in, d_out) in enumerate(dims):
        k_wm, k_wr, k_bm, k_br = keys[4 * i:4 * i + 4]
        params[f"l{i+1}"] = dict(
            W_mu=prior_sigma * jax.random.normal(k_wm, (d_in, d_out), jnp.float32),
            W_rho=prior_sigma * jax.random.normal(k_wr, (d_in, d_out), jnp.float32),
            b_mu=prior_sigma * jax.random.normal(k_bm, (d_out,), jnp.float32),
            b_rho=prior_sigma * jax.random.normal(k_br, (d_out,), jnp.float32),
        )
    return params


def _ref_log_gaussian_sum(x, mu, sigma):
    return jnp.sum(-0.5 * jnp.log(2.0 * jnp.pi) - jnp.log(jnp.abs(sigma))
                   - (x - mu) ** 2 / (2.0 * sigma ** 2))


def _reference_sampled(xf, params, eps, prior_sigma):
    """Plain-JAX reference for the sampled-weights forward + KL losses."""
    var, pri = 0.0, 0.0
    a = xf
    for i, l in enumerate(("l1", "l2", "l3")):
        mu_w, rho_w = params[l]["W_mu"], params[l]["W_rho"]
        mu_b, rho_b = params[l]["b_mu"], params[l]["b_rho"]
        sig_w = jnp.log1p(jnp.exp(rho_w))
        sig_b = jnp.log1p(jnp.exp(rho_b))
        W = mu_w + sig_w * eps[l]["W"]
        b = mu_b + sig_b * eps[l]["b"]
        var += _ref_log_gaussian_sum(W, mu_w, sig_w) + _ref_log_gaussian_sum(b, mu_b, sig_b)
        pri += (_ref_log_gaussian_sum(W, 0.0, prior_sigma)
                + _ref_log_gaussian_sum(b, 0.0, prior_sigma))
        a = a @ W + b
        if i < 2:
            a = jnp.maximum(a, 0.0)
    return jax.nn.softmax(a, axis=1), var, pri


def _reference_fixed(xf, params):
    a = xf
    for i, l in enumerate(("l1", "l2", "l3")):
        a = a @ params[l]["W_mu"] + params[l]["b_mu"]
        if i < 2:
            a = jnp.maximum(a, 0.0)
    return jax.nn.softmax(a, axis=1)


# ----------------------------- main -------------------------------------------

if __name__ == "__main__":
    key = jax.random.PRNGKey(0)
    k_param, k_x, k_eps = jax.random.split(key, 3)

    # Image-like input that BayesMLP flattens; n_input = C*H*W.
    B, C, H, W = 2, 4, 16, 16
    n_input = C * H * W          # 1024
    num_hidden_units = 32
    n_output = 10
    prior_sigma = 0.1

    params = init_bayes_mlp_params(k_param, n_input, n_output,
                                   num_hidden_units, prior_sigma)
    x = jax.random.normal(k_x, (B, C, H, W), jnp.float32)

    # Sampled-weights forward (fix_weights=False): fused sampling + KL + MLP.
    out, (var_loss, prior_loss) = bayes_mlp_forward(
        x, params, k_eps, prior_sigma, fix_weights=False)
    out = jax.block_until_ready(out)

    # Fixed-weights forward (fix_weights=True): mean-weight path.
    out_fixed, _ = bayes_mlp_forward(
        x, params, k_eps, prior_sigma, fix_weights=True)
    out_fixed = jax.block_until_ready(out_fixed)

    # References (same eps draws as the kernel wrapper).
    xf = x.reshape(B, -1)
    eps = _draw_eps(k_eps, params, prior_sigma)
    ref_out, ref_var, ref_pri = _reference_sampled(xf, params, eps, prior_sigma)
    ref_fixed = _reference_fixed(xf, params)

    # Sanity + correctness checks.
    assert out.shape == (B, n_output)
    assert bool(jnp.all(jnp.isfinite(out)))
    assert bool(jnp.isfinite(var_loss)) and bool(jnp.isfinite(prior_loss))
    assert jnp.allclose(jnp.sum(out, axis=1), 1.0, atol=1e-4)
    assert jnp.allclose(jnp.sum(out_fixed, axis=1), 1.0, atol=1e-4)
    assert jnp.allclose(out, ref_out, atol=3e-3, rtol=3e-2)
    assert jnp.allclose(out_fixed, ref_fixed, atol=3e-3, rtol=3e-2)
    assert jnp.allclose(var_loss, ref_var, rtol=5e-3, atol=1.0)
    assert jnp.allclose(prior_loss, ref_pri, rtol=5e-3, atol=1.0)

    print("KERNEL_OK")
</pallas_src>

<mosaic_0001>
module attributes {stable_mosaic.version = 11 : i64} {
  func.func @_bayes_mlp_sampled_kernel(%arg0: memref<4x2x256xf32, #tpu.memory_space<vmem>>, %arg1: memref<4x256x32xf32, #tpu.memory_space<vmem>>, %arg2: memref<4x256x32xf32, #tpu.memory_space<vmem>>, %arg3: memref<4x256x32xf32, #tpu.memory_space<vmem>>, %arg4: memref<32x32xf32, #tpu.memory_space<vmem>>, %arg5: memref<32x32xf32, #tpu.memory_space<vmem>>, %arg6: memref<32x32xf32, #tpu.memory_space<vmem>>, %arg7: memref<32x10xf32, #tpu.memory_space<vmem>>, %arg8: memref<32x10xf32, #tpu.memory_space<vmem>>, %arg9: memref<32x10xf32, #tpu.memory_space<vmem>>, %arg10: memref<3x32xf32, #tpu.memory_space<vmem>>, %arg11: memref<3x32xf32, #tpu.memory_space<vmem>>, %arg12: memref<3x10xf32, #tpu.memory_space<vmem>>, %arg13: memref<2x10xf32, #tpu.memory_space<vmem>>, %arg14: memref<1x2xf32, #tpu.memory_space<vmem>>) attributes {dimension_semantics = [], scalar_prefetch = 0 : i64, scratch_operands = 0 : i64, tpu.core_type = #tpu.core_type<tc>} {
    %cst = arith.constant 0.000000e+00 : f32
    %0 = vector.broadcast %cst : f32 to vector<1x1xf32>
    %cst_0 = arith.constant 0.000000e+00 : f32
    %1 = vector.broadcast %cst_0 : f32 to vector<2x32xf32>
    %c0_i32 = arith.constant 0 : i32
    %c4_i32 = arith.constant 4 : i32
    %2 = arith.addi %c0_i32, %c4_i32 : i32
    %c1_i32 = arith.constant 1 : i32
    %3:4 = scf.for %arg15 = %c0_i32 to %2 step %c1_i32 iter_args(%arg16 = %1, %arg17 = %0, %arg18 = %0, %arg19 = %0) -> (vector<2x32xf32>, vector<1x1xf32>, vector<1x1xf32>, vector<1x1xf32>)  : i32 {
      %217 = arith.index_cast %arg15 : i32 to index
      %c0_75 = arith.constant 0 : index
      %c0_76 = arith.constant 0 : index
      %218 = vector.load %arg1[%217, %c0_75, %c0_76] : memref<4x256x32xf32, #tpu.memory_space<vmem>>, vector<1x256x32xf32>
      %219 = vector.shape_cast %218 : vector<1x256x32xf32> to vector<256x32xf32>
      %220 = arith.index_cast %arg15 : i32 to index
      %c0_77 = arith.constant 0 : index
      %c0_78 = arith.constant 0 : index
      %221 = vector.load %arg2[%220, %c0_77, %c0_78] : memref<4x256x32xf32, #tpu.memory_space<vmem>>, vector<1x256x32xf32>
      %222 = vector.shape_cast %221 : vector<1x256x32xf32> to vector<256x32xf32>
      %223 = arith.index_cast %arg15 : i32 to index
      %c0_79 = arith.constant 0 : index
      %c0_80 = arith.constant 0 : index
      %224 = vector.load %arg3[%223, %c0_79, %c0_80] : memref<4x256x32xf32, #tpu.memory_space<vmem>>, vector<1x256x32xf32>
      %225 = vector.shape_cast %224 : vector<1x256x32xf32> to vector<256x32xf32>
      %cst_81 = arith.constant 0.000000e+00 : f32
      %226 = vector.broadcast %cst_81 : f32 to vector<256x32xf32>
      %227 = arith.maximumf %222, %226 : vector<256x32xf32>
      %228 = math.absf %222 : vector<256x32xf32>
      %cst_82 = arith.constant 0.000000e+00 : f32
      %229 = vector.broadcast %cst_82 : f32 to vector<256x32xf32>
      %230 = arith.subf %229, %228 : vector<256x32xf32>
      %231 = math.exp %230 : vector<256x32xf32>
      %cst_83 = arith.constant 1.000000e+00 : f32
      %232 = vector.broadcast %cst_83 : f32 to vector<256x32xf32>
      %233 = arith.addf %232, %231 : vector<256x32xf32>
      %234 = math.log %233 : vector<256x32xf32>
      %235 = arith.addf %227, %234 : vector<256x32xf32>
      %236 = arith.mulf %235, %225 : vector<256x32xf32>
      %237 = arith.addf %219, %236 : vector<256x32xf32>
      %238 = math.log %235 : vector<256x32xf32>
      %239 = vector.shape_cast %238 : vector<256x32xf32> to vector<1x256x32xf32>
      %cst_84 = arith.constant dense<0.000000e+00> : vector<1xf32>
      %240 = vector.multi_reduction <add>, %239, %cst_84 [1, 2] : vector<1x256x32xf32> to vector<1xf32>
      %241 = vector.shape_cast %240 : vector<1xf32> to vector<1x1x1xf32>
      %242 = vector.extract %241[0, 0, 0] : f32 from vector<1x1x1xf32>
      %243 = vector.broadcast %242 : f32 to vector<1x1xf32>
      %244 = arith.mulf %225, %225 : vector<256x32xf32>
      %245 = vector.shape_cast %244 : vector<256x32xf32> to vector<1x256x32xf32>
      %cst_85 = arith.constant dense<0.000000e+00> : vector<1xf32>
      %246 = vector.multi_reduction <add>, %245, %cst_85 [1, 2] : vector<1x256x32xf32> to vector<1xf32>
      %247 = vector.shape_cast %246 : vector<1xf32> to vector<1x1x1xf32>
      %248 = vector.extract %247[0, 0, 0] : f32 from vector<1x1x1xf32>
      %249 = vector.broadcast %248 : f32 to vector<1x1xf32>
      %250 = arith.mulf %237, %237 : vector<256x32xf32>
      %251 = vector.shape_cast %250 : vector<256x32xf32> to vector<1x256x32xf32>
      %cst_86 = arith.constant dense<0.000000e+00> : vector<1xf32>
      %252 = vector.multi_reduction <add>, %251, %cst_86 [1, 2] : vector<1x256x32xf32> to vector<1xf32>
      %253 = vector.shape_cast %252 : vector<1xf32> to vector<1x1x1xf32>
      %254 = vector.extract %253[0, 0, 0] : f32 from vector<1x1x1xf32>
      %255 = vector.broadcast %254 : f32 to vector<1x1xf32>
      %256 = arith.index_cast %arg15 : i32 to index
      %c0_87 = arith.constant 0 : index
      %c0_88 = arith.constant 0 : index
      %257 = vector.load %arg0[%256, %c0_87, %c0_88] : memref<4x2x256xf32, #tpu.memory_space<vmem>>, vector<1x2x256xf32>
      %258 = vector.shape_cast %257 : vector<1x2x256xf32> to vector<2x256xf32>
      %cst_89 = arith.constant dense<0.000000e+00> : vector<2x32xf32>
      %259 = tpu.matmul %258, %237, %cst_89 {dimension_numbers = #tpu.dot_dimension_numbers<[1], [0], [0], [1], [0, 0, 1, 1], [], []>} : vector<2x256xf32>, vector<256x32xf32>, vector<2x32xf32> -> vector<2x32xf32>
      %260 = arith.addf %arg16, %259 : vector<2x32xf32>
      %261 = arith.addf %arg17, %243 : vector<1x1xf32>
      %262 = arith.addf %arg18, %249 : vector<1x1xf32>
      %263 = arith.addf %arg19, %255 : vector<1x1xf32>
      scf.yield %260, %261, %262, %263 : vector<2x32xf32>, vector<1x1xf32>, vector<1x1xf32>, vector<1x1xf32>
    }
    %c4_i32_1 = arith.constant 4 : i32
    %c0 = arith.constant 0 : index
    %c0_2 = arith.constant 0 : index
    %4 = vector.load %arg10[%c0, %c0_2] : memref<3x32xf32, #tpu.memory_space<vmem>>, vector<1x32xf32>
    %c1 = arith.constant 1 : index
    %c0_3 = arith.constant 0 : index
    %5 = vector.load %arg10[%c1, %c0_3] : memref<3x32xf32, #tpu.memory_space<vmem>>, vector<1x32xf32>
    %c2 = arith.constant 2 : index
    %c0_4 = arith.constant 0 : index
    %6 = vector.load %arg10[%c2, %c0_4] : memref<3x32xf32, #tpu.memory_space<vmem>>, vector<1x32xf32>
    %cst_5 = arith.constant 0.000000e+00 : f32
    %7 = vector.broadcast %cst_5 : f32 to vector<1x32xf32>
    %8 = arith.maximumf %5, %7 : vector<1x32xf32>
    %9 = math.absf %5 : vector<1x32xf32>
    %cst_6 = arith.constant 0.000000e+00 : f32
    %10 = vector.broadcast %cst_6 : f32 to vector<1x32xf32>
    %11 = arith.subf %10, %9 : vector<1x32xf32>
    %12 = math.exp %11 : vector<1x32xf32>
    %cst_7 = arith.constant 1.000000e+00 : f32
    %13 = vector.broadcast %cst_7 : f32 to vector<1x32xf32>
    %14 = arith.addf %13, %12 : vector<1x32xf32>
    %15 = math.log %14 : vector<1x32xf32>
    %16 = arith.addf %8, %15 : vector<1x32xf32>
    %17 = arith.mulf %16, %6 : vector<1x32xf32>
    %18 = arith.addf %4, %17 : vector<1x32xf32>
    %19 = math.log %16 : vector<1x32xf32>
    %20 = vector.shape_cast %19 : vector<1x32xf32> to vector<1x1x32xf32>
    %cst_8 = arith.constant dense<0.000000e+00> : vector<1xf32>
    %21 = vector.multi_reduction <add>, %20, %cst_8 [1, 2] : vector<1x1x32xf32> to vector<1xf32>
    %22 = vector.shape_cast %21 : vector<1xf32> to vector<1x1x1xf32>
    %23 = vector.extract %22[0, 0, 0] : f32 from vector<1x1x1xf32>
    %24 = vector.broadcast %23 : f32 to vector<1x1xf32>
    %25 = arith.mulf %6, %6 : vector<1x32xf32>
    %26 = vector.shape_cast %25 : vector<1x32xf32> to vector<1x1x32xf32>
    %cst_9 = arith.constant dense<0.000000e+00> : vector<1xf32>
    %27 = vector.multi_reduction <add>, %26, %cst_9 [1, 2] : vector<1x1x32xf32> to vector<1xf32>
    %28 = vector.shape_cast %27 : vector<1xf32> to vector<1x1x1xf32>
    %29 = vector.extract %28[0, 0, 0] : f32 from vector<1x1x1xf32>
    %30 = vector.broadcast %29 : f32 to vector<1x1xf32>
    %31 = arith.mulf %18, %18 : vector<1x32xf32>
    %32 = vector.shape_cast %31 : vector<1x32xf32> to vector<1x1x32xf32>
    %cst_10 = arith.constant dense<0.000000e+00> : vector<1xf32>
    %33 = vector.multi_reduction <add>, %32, %cst_10 [1, 2] : vector<1x1x32xf32> to vector<1xf32>
    %34 = vector.shape_cast %33 : vector<1xf32> to vector<1x1x1xf32>
    %35 = vector.extract %34[0, 0, 0] : f32 from vector<1x1x1xf32>
    %36 = vector.broadcast %35 : f32 to vector<1x1xf32>
    %37 = arith.addf %3#1, %24 : vector<1x1xf32>
    %38 = arith.addf %3#2, %30 : vector<1x1xf32>
    %39 = arith.addf %3#3, %36 : vector<1x1xf32>
    %40 = vector.broadcast %18 : vector<1x32xf32> to vector<2x32xf32>
    %41 = arith.addf %3#0, %40 : vector<2x32xf32>
    %cst_11 = arith.constant 0.000000e+00 : f32
    %42 = vector.broadcast %cst_11 : f32 to vector<2x32xf32>
    %43 = arith.maximumf %41, %42 : vector<2x32xf32>
    %c0_12 = arith.constant 0 : index
    %c0_13 = arith.constant 0 : index
    %44 = vector.load %arg4[%c0_12, %c0_13] : memref<32x32xf32, #tpu.memory_space<vmem>>, vector<32x32xf32>
    %c0_14 = arith.constant 0 : index
    %c0_15 = arith.constant 0 : index
    %45 = vector.load %arg5[%c0_14, %c0_15] : memref<32x32xf32, #tpu.memory_space<vmem>>, vector<32x32xf32>
    %c0_16 = arith.constant 0 : index
    %c0_17 = arith.constant 0 : index
    %46 = vector.load %arg6[%c0_16, %c0_17] : memref<32x32xf32, #tpu.memory_space<vmem>>, vector<32x32xf32>
    %cst_18 = arith.constant 0.000000e+00 : f32
    %47 = vector.broadcast %cst_18 : f32 to vector<32x32xf32>
    %48 = arith.maximumf %45, %47 : vector<32x32xf32>
    %49 = math.absf %45 : vector<32x32xf32>
    %cst_19 = arith.constant 0.000000e+00 : f32
    %50 = vector.broadcast %cst_19 : f32 to vector<32x32xf32>
    %51 = arith.subf %50, %49 : vector<32x32xf32>
    %52 = math.exp %51 : vector<32x32xf32>
    %cst_20 = arith.constant 1.000000e+00 : f32
    %53 = vector.broadcast %cst_20 : f32 to vector<32x32xf32>
    %54 = arith.addf %53, %52 : vector<32x32xf32>
    %55 = math.log %54 : vector<32x32xf32>
    %56 = arith.addf %48, %55 : vector<32x32xf32>
    %57 = arith.mulf %56, %46 : vector<32x32xf32>
    %58 = arith.addf %44, %57 : vector<32x32xf32>
    %59 = math.log %56 : vector<32x32xf32>
    %60 = vector.shape_cast %59 : vector<32x32xf32> to vector<1x32x32xf32>
    %cst_21 = arith.constant dense<0.000000e+00> : vector<1xf32>
    %61 = vector.multi_reduction <add>, %60, %cst_21 [1, 2] : vector<1x32x32xf32> to vector<1xf32>
    %62 = vector.shape_cast %61 : vector<1xf32> to vector<1x1x1xf32>
    %63 = vector.extract %62[0, 0, 0] : f32 from vector<1x1x1xf32>
    %64 = vector.broadcast %63 : f32 to vector<1x1xf32>
    %65 = arith.mulf %46, %46 : vector<32x32xf32>
    %66 = vector.shape_cast %65 : vector<32x32xf32> to vector<1x32x32xf32>
    %cst_22 = arith.constant dense<0.000000e+00> : vector<1xf32>
    %67 = vector.multi_reduction <add>, %66, %cst_22 [1, 2] : vector<1x32x32xf32> to vector<1xf32>
    %68 = vector.shape_cast %67 : vector<1xf32> to vector<1x1x1xf32>
    %69 = vector.extract %68[0, 0, 0] : f32 from vector<1x1x1xf32>
    %70 = vector.broadcast %69 : f32 to vector<1x1xf32>
    %71 = arith.mulf %58, %58 : vector<32x32xf32>
    %72 = vector.shape_cast %71 : vector<32x32xf32> to vector<1x32x32xf32>
    %cst_23 = arith.constant dense<0.000000e+00> : vector<1xf32>
    %73 = vector.multi_reduction <add>, %72, %cst_23 [1, 2] : vector<1x32x32xf32> to vector<1xf32>
    %74 = vector.shape_cast %73 : vector<1xf32> to vector<1x1x1xf32>
    %75 = vector.extract %74[0, 0, 0] : f32 from vector<1x1x1xf32>
    %76 = vector.broadcast %75 : f32 to vector<1x1xf32>
    %77 = arith.addf %37, %64 : vector<1x1xf32>
    %78 = arith.addf %38, %70 : vector<1x1xf32>
    %79 = arith.addf %39, %76 : vector<1x1xf32>
    %c0_24 = arith.constant 0 : index
    %c0_25 = arith.constant 0 : index
    %80 = vector.load %arg11[%c0_24, %c0_25] : memref<3x32xf32, #tpu.memory_space<vmem>>, vector<1x32xf32>
    %c1_26 = arith.constant 1 : index
    %c0_27 = arith.constant 0 : index
    %81 = vector.load %arg11[%c1_26, %c0_27] : memref<3x32xf32, #tpu.memory_space<vmem>>, vector<1x32xf32>
    %c2_28 = arith.constant 2 : index
    %c0_29 = arith.constant 0 : index
    %82 = vector.load %arg11[%c2_28, %c0_29] : memref<3x32xf32, #tpu.memory_space<vmem>>, vector<1x32xf32>
    %cst_30 = arith.constant 0.000000e+00 : f32
    %83 = vector.broadcast %cst_30 : f32 to vector<1x32xf32>
    %84 = arith.maximumf %81, %83 : vector<1x32xf32>
    %85 = math.absf %81 : vector<1x32xf32>
    %cst_31 = arith.constant 0.000000e+00 : f32
    %86 = vector.broadcast %cst_31 : f32 to vector<1x32xf32>
    %87 = arith.subf %86, %85 : vector<1x32xf32>
    %88 = math.exp %87 : vector<1x32xf32>
    %cst_32 = arith.constant 1.000000e+00 : f32
    %89 = vector.broadcast %cst_32 : f32 to vector<1x32xf32>
    %90 = arith.addf %89, %88 : vector<1x32xf32>
    %91 = math.log %90 : vector<1x32xf32>
    %92 = arith.addf %84, %91 : vector<1x32xf32>
    %93 = arith.mulf %92, %82 : vector<1x32xf32>
    %94 = arith.addf %80, %93 : vector<1x32xf32>
    %95 = math.log %92 : vector<1x32xf32>
    %96 = vector.shape_cast %95 : vector<1x32xf32> to vector<1x1x32xf32>
    %cst_33 = arith.constant dense<0.000000e+00> : vector<1xf32>
    %97 = vector.multi_reduction <add>, %96, %cst_33 [1, 2] : vector<1x1x32xf32> to vector<1xf32>
    %98 = vector.shape_cast %97 : vector<1xf32> to vector<1x1x1xf32>
    %99 = vector.extract %98[0, 0, 0] : f32 from vector<1x1x1xf32>
    %100 = vector.broadcast %99 : f32 to vector<1x1xf32>
    %101 = arith.mulf %82, %82 : vector<1x32xf32>
    %102 = vector.shape_cast %101 : vector<1x32xf32> to vector<1x1x32xf32>
    %cst_34 = arith.constant dense<0.000000e+00> : vector<1xf32>
    %103 = vector.multi_reduction <add>, %102, %cst_34 [1, 2] : vector<1x1x32xf32> to vector<1xf32>
    %104 = vector.shape_cast %103 : vector<1xf32> to vector<1x1x1xf32>
    %105 = vector.extract %104[0, 0, 0] : f32 from vector<1x1x1xf32>
    %106 = vector.broadcast %105 : f32 to vector<1x1xf32>
    %107 = arith.mulf %94, %94 : vector<1x32xf32>
    %108 = vector.shape_cast %107 : vector<1x32xf32> to vector<1x1x32xf32>
    %cst_35 = arith.constant dense<0.000000e+00> : vector<1xf32>
    %109 = vector.multi_reduction <add>, %108, %cst_35 [1, 2] : vector<1x1x32xf32> to vector<1xf32>
    %110 = vector.shape_cast %109 : vector<1xf32> to vector<1x1x1xf32>
    %111 = vector.extract %110[0, 0, 0] : f32 from vector<1x1x1xf32>
    %112 = vector.broadcast %111 : f32 to vector<1x1xf32>
    %113 = arith.addf %77, %100 : vector<1x1xf32>
    %114 = arith.addf %78, %106 : vector<1x1xf32>
    %115 = arith.addf %79, %112 : vector<1x1xf32>
    %cst_36 = arith.constant dense<0.000000e+00> : vector<2x32xf32>
    %116 = tpu.matmul %43, %58, %cst_36 {dimension_numbers = #tpu.dot_dimension_numbers<[1], [0], [0], [1], [0, 0, 1, 1], [], []>} : vector<2x32xf32>, vector<32x32xf32>, vector<2x32xf32> -> vector<2x32xf32>
    %117 = vector.broadcast %94 : vector<1x32xf32> to vector<2x32xf32>
    %118 = arith.addf %116, %117 : vector<2x32xf32>
    %cst_37 = arith.constant 0.000000e+00 : f32
    %119 = vector.broadcast %cst_37 : f32 to vector<2x32xf32>
    %120 = arith.maximumf %118, %119 : vector<2x32xf32>
    %c0_38 = arith.constant 0 : index
    %c0_39 = arith.constant 0 : index
    %121 = vector.load %arg7[%c0_38, %c0_39] : memref<32x10xf32, #tpu.memory_space<vmem>>, vector<32x10xf32>
    %c0_40 = arith.constant 0 : index
    %c0_41 = arith.constant 0 : index
    %122 = vector.load %arg8[%c0_40, %c0_41] : memref<32x10xf32, #tpu.memory_space<vmem>>, vector<32x10xf32>
    %c0_42 = arith.constant 0 : index
    %c0_43 = arith.constant 0 : index
    %123 = vector.load %arg9[%c0_42, %c0_43] : memref<32x10xf32, #tpu.memory_space<vmem>>, vector<32x10xf32>
    %cst_44 = arith.constant 0.000000e+00 : f32
    %124 = vector.broadcast %cst_44 : f32 to vector<32x10xf32>
    %125 = arith.maximumf %122, %124 : vector<32x10xf32>
    %126 = math.absf %122 : vector<32x10xf32>
    %cst_45 = arith.constant 0.000000e+00 : f32
    %127 = vector.broadcast %cst_45 : f32 to vector<32x10xf32>
    %128 = arith.subf %127, %126 : vector<32x10xf32>
    %129 = math.exp %128 : vector<32x10xf32>
    %cst_46 = arith.constant 1.000000e+00 : f32
    %130 = vector.broadcast %cst_46 : f32 to vector<32x10xf32>
    %131 = arith.addf %130, %129 : vector<32x10xf32>
    %132 = math.log %131 : vector<32x10xf32>
    %133 = arith.addf %125, %132 : vector<32x10xf32>
    %134 = arith.mulf %133, %123 : vector<32x10xf32>
    %135 = arith.addf %121, %134 : vector<32x10xf32>
    %136 = math.log %133 : vector<32x10xf32>
    %137 = vector.shape_cast %136 : vector<32x10xf32> to vector<1x32x10xf32>
    %cst_47 = arith.constant dense<0.000000e+00> : vector<1xf32>
    %138 = vector.multi_reduction <add>, %137, %cst_47 [1, 2] : vector<1x32x10xf32> to vector<1xf32>
    %139 = vector.shape_cast %138 : vector<1xf32> to vector<1x1x1xf32>
    %140 = vector.extract %139[0, 0, 0] : f32 from vector<1x1x1xf32>
    %141 = vector.broadcast %140 : f32 to vector<1x1xf32>
    %142 = arith.mulf %123, %123 : vector<32x10xf32>
    %143 = vector.shape_cast %142 : vector<32x10xf32> to vector<1x32x10xf32>
    %cst_48 = arith.constant dense<0.000000e+00> : vector<1xf32>
    %144 = vector.multi_reduction <add>, %143, %cst_48 [1, 2] : vector<1x32x10xf32> to vector<1xf32>
    %145 = vector.shape_cast %144 : vector<1xf32> to vector<1x1x1xf32>
    %146 = vector.extract %145[0, 0, 0] : f32 from vector<1x1x1xf32>
    %147 = vector.broadcast %146 : f32 to vector<1x1xf32>
    %148 = arith.mulf %135, %135 : vector<32x10xf32>
    %149 = vector.shape_cast %148 : vector<32x10xf32> to vector<1x32x10xf32>
    %cst_49 = arith.constant dense<0.000000e+00> : vector<1xf32>
    %150 = vector.multi_reduction <add>, %149, %cst_49 [1, 2] : vector<1x32x10xf32> to vector<1xf32>
    %151 = vector.shape_cast %150 : vector<1xf32> to vector<1x1x1xf32>
    %152 = vector.extract %151[0, 0, 0] : f32 from vector<1x1x1xf32>
    %153 = vector.broadcast %152 : f32 to vector<1x1xf32>
    %154 = arith.addf %113, %141 : vector<1x1xf32>
    %155 = arith.addf %114, %147 : vector<1x1xf32>
    %156 = arith.addf %115, %153 : vector<1x1xf32>
    %c0_50 = arith.constant 0 : index
    %c0_51 = arith.constant 0 : index
    %157 = vector.load %arg12[%c0_50, %c0_51] : memref<3x10xf32, #tpu.memory_space<vmem>>, vector<1x10xf32>
    %c1_52 = arith.constant 1 : index
    %c0_53 = arith.constant 0 : index
    %158 = vector.load %arg12[%c1_52, %c0_53] : memref<3x10xf32, #tpu.memory_space<vmem>>, vector<1x10xf32>
    %c2_54 = arith.constant 2 : index
    %c0_55 = arith.constant 0 : index
    %159 = vector.load %arg12[%c2_54, %c0_55] : memref<3x10xf32, #tpu.memory_space<vmem>>, vector<1x10xf32>
    %cst_56 = arith.constant 0.000000e+00 : f32
    %160 = vector.broadcast %cst_56 : f32 to vector<1x10xf32>
    %161 = arith.maximumf %158, %160 : vector<1x10xf32>
    %162 = math.absf %158 : vector<1x10xf32>
    %cst_57 = arith.constant 0.000000e+00 : f32
    %163 = vector.broadcast %cst_57 : f32 to vector<1x10xf32>
    %164 = arith.subf %163, %162 : vector<1x10xf32>
    %165 = math.exp %164 : vector<1x10xf32>
    %cst_58 = arith.constant 1.000000e+00 : f32
    %166 = vector.broadcast %cst_58 : f32 to vector<1x10xf32>
    %167 = arith.addf %166, %165 : vector<1x10xf32>
    %168 = math.log %167 : vector<1x10xf32>
    %169 = arith.addf %161, %168 : vector<1x10xf32>
    %170 = arith.mulf %169, %159 : vector<1x10xf32>
    %171 = arith.addf %157, %170 : vector<1x10xf32>
    %172 = math.log %169 : vector<1x10xf32>
    %173 = vector.shape_cast %172 : vector<1x10xf32> to vector<1x1x10xf32>
    %cst_59 = arith.constant dense<0.000000e+00> : vector<1xf32>
    %174 = vector.multi_reduction <add>, %173, %cst_59 [1, 2] : vector<1x1x10xf32> to vector<1xf32>
    %175 = vector.shape_cast %174 : vector<1xf32> to vector<1x1x1xf32>
    %176 = vector.extract %175[0, 0, 0] : f32 from vector<1x1x1xf32>
    %177 = vector.broadcast %176 : f32 to vector<1x1xf32>
    %178 = arith.mulf %159, %159 : vector<1x10xf32>
    %179 = vector.shape_cast %178 : vector<1x10xf32> to vector<1x1x10xf32>
    %cst_60 = arith.constant dense<0.000000e+00> : vector<1xf32>
    %180 = vector.multi_reduction <add>, %179, %cst_60 [1, 2] : vector<1x1x10xf32> to vector<1xf32>
    %181 = vector.shape_cast %180 : vector<1xf32> to vector<1x1x1xf32>
    %182 = vector.extract %181[0, 0, 0] : f32 from vector<1x1x1xf32>
    %183 = vector.broadcast %182 : f32 to vector<1x1xf32>
    %184 = arith.mulf %171, %171 : vector<1x10xf32>
    %185 = vector.shape_cast %184 : vector<1x10xf32> to vector<1x1x10xf32>
    %cst_61 = arith.constant dense<0.000000e+00> : vector<1xf32>
    %186 = vector.multi_reduction <add>, %185, %cst_61 [1, 2] : vector<1x1x10xf32> to vector<1xf32>
    %187 = vector.shape_cast %186 : vector<1xf32> to vector<1x1x1xf32>
    %188 = vector.extract %187[0, 0, 0] : f32 from vector<1x1x1xf32>
    %189 = vector.broadcast %188 : f32 to vector<1x1xf32>
    %190 = arith.addf %154, %177 : vector<1x1xf32>
    %191 = arith.addf %155, %183 : vector<1x1xf32>
    %192 = arith.addf %156, %189 : vector<1x1xf32>
    %cst_62 = arith.constant dense<0.000000e+00> : vector<2x10xf32>
    %193 = tpu.matmul %120, %135, %cst_62 {dimension_numbers = #tpu.dot_dimension_numbers<[1], [0], [0], [1], [0, 0, 1, 1], [], []>} : vector<2x32xf32>, vector<32x10xf32>, vector<2x10xf32> -> vector<2x10xf32>
    %194 = vector.broadcast %171 : vector<1x10xf32> to vector<2x10xf32>
    %195 = arith.addf %193, %194 : vector<2x10xf32>
    %cst_63 = arith.constant dense<0xFF800000> : vector<2xf32>
    %196 = vector.multi_reduction <maximumf>, %195, %cst_63 [1] : vector<2x10xf32> to vector<2xf32>
    %197 = vector.shape_cast %196 : vector<2xf32> to vector<2x1xf32>
    %198 = vector.broadcast %197 : vector<2x1xf32> to vector<2x10xf32>
    %199 = arith.subf %195, %198 : vector<2x10xf32>
    %200 = math.exp %199 : vector<2x10xf32>
    %cst_64 = arith.constant dense<0.000000e+00> : vector<2xf32>
    %201 = vector.multi_reduction <add>, %200, %cst_64 [1] : vector<2x10xf32> to vector<2xf32>
    %202 = vector.shape_cast %201 : vector<2xf32> to vector<2x1xf32>
    %203 = vector.broadcast %202 : vector<2x1xf32> to vector<2x10xf32>
    %204 = arith.divf %200, %203 : vector<2x10xf32>
    %c0_65 = arith.constant 0 : index
    %c0_66 = arith.constant 0 : index
    %205 = vector.load %arg13[%c0_65, %c0_66] : memref<2x10xf32, #tpu.memory_space<vmem>>, vector<2x10xf32>
    tpu.vector_store %arg13[%c0_65, %c0_66], %204 {strides = array<i32>} : memref<2x10xf32, #tpu.memory_space<vmem>>, vector<2x10xf32>,
    %cst_67 = arith.constant -31414.832 : f32
    %206 = vector.broadcast %cst_67 : f32 to vector<1x1xf32>
    %207 = arith.subf %206, %190 : vector<1x1xf32>
    %cst_68 = arith.constant 5.000000e-01 : f32
    %208 = vector.broadcast %cst_68 : f32 to vector<1x1xf32>
    %209 = arith.mulf %208, %191 : vector<1x1xf32>
    %210 = arith.subf %207, %209 : vector<1x1xf32>
    %c0_69 = arith.constant 0 : index
    %c0_70 = arith.constant 0 : index
    %211 = vector.load %arg14[%c0_69, %c0_70] : memref<1x2xf32, #tpu.memory_space<vmem>>, vector<1x1xf32>
    tpu.vector_store %arg14[%c0_69, %c0_70], %210 {strides = array<i32>} : memref<1x2xf32, #tpu.memory_space<vmem>>, vector<1x1xf32>,
    %cst_71 = arith.constant 5.000000e+01 : f32
    %212 = vector.broadcast %cst_71 : f32 to vector<1x1xf32>
    %213 = arith.mulf %212, %192 : vector<1x1xf32>
    %cst_72 = arith.constant 47301.3398 : f32
    %214 = vector.broadcast %cst_72 : f32 to vector<1x1xf32>
    %215 = arith.subf %214, %213 : vector<1x1xf32>
    %c0_73 = arith.constant 0 : index
    %c1_74 = arith.constant 1 : index
    %216 = vector.load %arg14[%c0_73, %c1_74] : memref<1x2xf32, #tpu.memory_space<vmem>>, vector<1x1xf32>
    tpu.vector_store %arg14[%c0_73, %c1_74], %215 {strides = array<i32>} : memref<1x2xf32, #tpu.memory_space<vmem>>, vector<1x1xf32>,
    return
  }
}

</mosaic_0001>

<bundles_post_ra>
// kernel: bayes_mlp_forward.1
= control target key start
LH: loop header
LB: loop body
LE: loop exit
PB: predicated region body
PF: predicated region fallthrough
CT: control target
= control target key end

     0   :  { %20 = vsyncpa [#allocation3], 0  ;;  %v2193_v0 = vmov 0.0   ;;  %v2195_v1 = vmov 0.0   ;;  %v2197_v2 = vmov 0.0   ;;  %v2199_v3 = vmov 0.0   ;;  %s3295_s0 = inlined_call_operand.vmem [shape: f32[4,2,256], index: 0, kind: input, shape index: {}]   ;;  %s3296_s1 = inlined_call_operand.vmem [shape: f32[4,256,32], index: 1, kind: input, shape index: {}]   ;;  %s3297_s2 = inlined_call_operand.vmem [shape: f32[4,256,32], index: 2, kind: input, shape index: {}]   ;;  %s3298_s3 = inlined_call_operand.vmem [shape: f32[4,256,32], index: 3, kind: input, shape index: {}]   ;;  %s3299_s4 = inlined_call_operand.vmem [shape: f32[32,32], index: 4, kind: input, shape index: {}]   ;;  %s3300_s5 = inlined_call_operand.vmem [shape: f32[32,32], index: 5, kind: input, shape index: {}]   ;;  %s3301_s6 = inlined_call_operand.vmem [shape: f32[32,32], index: 6, kind: input, shape index: {}]   ;;  %s3302_s7 = inlined_call_operand.vmem [shape: f32[32,10], index: 7, kind: input, shape index: {}]   ;;  %s3303_s8 = inlined_call_operand.vmem [shape: f32[32,10], index: 8, kind: input, shape index: {}]   ;;  %s3304_s9 = inlined_call_operand.vmem [shape: f32[32,10], index: 9, kind: input, shape index: {}]   ;;  %s3305_s10 = inlined_call_operand.vmem [shape: f32[3,32], index: 10, kind: input, shape index: {}]   ;;  %s3306_s11 = inlined_call_operand.vmem [shape: f32[3,32], index: 11, kind: input, shape index: {}]   ;;  %s3307_s12 = inlined_call_operand.vmem [shape: f32[3,10], index: 12, kind: input, shape index: {}]   ;;  %s3308_s13 = inlined_call_operand.hbm [shape: f32[2,10], index: 13, kind: output, shape index: {0}]   ;;  %s3309_s14 = inlined_call_operand.vmem [shape: f32[1,2], index: 14, kind: output, shape index: {1}]  }
   0x1   :  { %s2201_s29 = smov 0  }
   0x2 LB: > { %3320 = vst [vmem:[#allocation5_spill] sm:$0xff] %v2096_v0  ;;  %3321 = vst [vmem:[#allocation6_spill] sm:$0xff] %v2100_v1  ;;  %s2219_s30 = sshll.u32 %s2112_s29, 8  ;;  %vm573_vm0 = vcmask 261120   ;;  %s1596_s24 = sshll.u32 %s2112_s29, 2  ;;  %s2112_s29 = sphi %s2201_s29, %s52_s29   ;;  %v2108_v3 = vphi %v2199_v3, %v3355_v3   ;;  %v2104_v2 = vphi %v2197_v2, %v3354_v2   ;;  %v2100_v1 = vphi %v2195_v1, %v3353_v1   ;;  %v2096_v0 = vphi %v2193_v0, %v3352_v0  }
   0x3   : > { %3322 = vst [vmem:[#allocation7_spill] sm:$0xff] %v2104_v2  ;;  %3323 = vst [vmem:[#allocation8_spill] sm:$0xff] %v2108_v3  ;;  %s2225_s17 = scalar_lea.vmem %s3297_s2, %s2219_s30  ;;  %s2237_s20 = scalar_lea.vmem %s3298_s3, %s2219_s30 }
   0x4   : > { %v2228_v4 = vld [vmem:[%s2225_s17 + $0x80] sm:$0xff]  ;;  %v2231_v5 = vld [vmem:[%s2225_s17 + $0x88] sm:$0xff]  ;;  %v2260_v20 = vld [vmem:[%s2225_s17 + $0x90] sm:$0xff]  ;;  %s2336_s23 = scalar_lea.vmem %s3296_s1, %s2219_s30  ;;  %s859_s27 = scalar_lea.vmem %s3295_s0, %s1596_s24 }
   0x5   : > { %v205_v6 = vand.u32 2147483647, %v2228_v4  ;;  %v206_v7 = vand.u32 2147483647, %v2231_v5  ;;  %v2242_v8 = vld [vmem:[%s2225_s17] sm:$0xff]  ;;  %v2245_v10 = vld [vmem:[%s2225_s17 + $0x8] sm:$0xff] }
   0x6   : > { %v2248_v12 = vld [vmem:[%s2237_s20] sm:$0xff]  ;;  %v2251_v13 = vld [vmem:[%s2237_s20 + $0x8] sm:$0xff]  ;;  %v189_v15 = vand.u32 2147483647, %v2242_v8  ;;  %v190_v16 = vand.u32 2147483647, %v2245_v10 }
   0x7   : > { %v237_v9 = vsub.f32 0.0, %v205_v6  ;;  %v238_v11 = vsub.f32 0.0, %v206_v7  ;;  %v647_v17 = vmul.f32 %v2248_v12, %v2248_v12  ;;  %v648_v19 = vmul.f32 %v2251_v13, %v2251_v13  ;;  %v2264_v24 = vld [vmem:[%s2225_s17 + $0x98] sm:$0xff]  ;;  %v2268_v26 = vld [vmem:[%s2225_s17 + $0x10] sm:$0xff]  ;;  %v2286_v42 = vld [vmem:[%s2225_s17 + $0xa0] sm:$0xff]  ;;  %s52_s29 = sadd.s32 1, %s2112_s29  }
   0x8   : > { %v221_v21 = vsub.f32 0.0, %v189_v15  ;;  %v222_v22 = vsub.f32 0.0, %v190_v16  ;;  %v207_v30 = vand.u32 2147483647, %v2260_v20  ;;  %v208_v31 = vand.u32 2147483647, %v2264_v24 }
   0x9   : > { %v285_v14 = vmul.f32 1.442695, %v237_v9  ;;  %v287_v18 = vmul.f32 1.442695, %v238_v11  ;;  %v679_v23 = vsel %vm573_vm0, %v647_v17, 0.0  ;;  %v680_v25 = vsel %vm573_vm0, %v648_v19, 0.0 }
   0xa   : > { %v253_v27 = vmul.f32 1.442695, %v221_v21  ;;  %v255_v28 = vmul.f32 1.442695, %v222_v22  ;;  %v681_v29 = vadd.f32 %v680_v25, %v679_v23  ;;  %v2273_v32 = vld [vmem:[%s2225_s17 + $0x18] sm:$0xff]  ;;  %v239_v33 = vsub.f32 0.0, %v207_v30 }
   0xb   : > { %1788 = vpow2.f32 %v285_v14  ;;  %v191_v34 = vand.u32 2147483647, %v2268_v26  ;;  %v240_v35 = vsub.f32 0.0, %v208_v31  ;;  %v2277_v36 = vld [vmem:[%s2237_s20 + $0x10] sm:$0xff]  ;;  %v2280_v37 = vld [vmem:[%s2237_s20 + $0x18] sm:$0xff]  ;;  %v2291_v45 = vld [vmem:[%s2225_s17 + $0xa8] sm:$0xff] }
   0xc   : > { %1790 = vpow2.f32 %v287_v18  ;;  %v289_v38 = vmul.f32 1.442695, %v239_v33  ;;  %v192_v39 = vand.u32 2147483647, %v2273_v32  ;;  %v649_v41 = vmul.f32 %v2277_v36, %v2277_v36  ;;  %v2298_v61 = vld [vmem:[%s2225_s17 + $0x20] sm:$0xff]  ;;  %v2301_v7 = vld [vmem:[%s2225_s17 + $0x28] sm:$0xff] }
   0xd   : > { %1792 = vpow2.f32 %v253_v27  ;;  %v223_v40 = vsub.f32 0.0, %v191_v34  ;;  %v291_v43 = vmul.f32 1.442695, %v240_v35  ;;  %v650_v44 = vmul.f32 %v2280_v37, %v2280_v37  ;;  %v2304_v9 = vld [vmem:[%s2237_s20 + $0x20] sm:$0xff]  ;;  %v2307_v15 = vld [vmem:[%s2237_s20 + $0x28] sm:$0xff]  ;;  %v2320_v35 = vld [vmem:[%s2225_s17 + $0xb0] sm:$0xff] }
   0xe   : > { %1794 = vpow2.f32 %v255_v28  ;;  %v224_v46 = vsub.f32 0.0, %v192_v39  ;;  %v682_v48 = vsel %vm573_vm0, %v649_v41, 0.0  ;;  %v209_v51 = vand.u32 2147483647, %v2286_v42  ;;  %p49_p0 = scmp.ge.s32.totalorder %s52_s29, 4  }
   0xf   : > { %1796 = vpow2.f32 %v289_v38  ;;  %v257_v47 = vmul.f32 1.442695, %v223_v40  ;;  %v683_v49 = vadd.f32 %v682_v48, %v681_v29  ;;  %v684_v50 = vsel %vm573_vm0, %v650_v44, 0.0  ;;  %v2323_v40 = vld [vmem:[%s2225_s17 + $0xb8] sm:$0xff] }
  0x10   : > { %1798 = vpow2.f32 %v291_v43  ;;  %v259_v53 = vmul.f32 1.442695, %v224_v46  ;;  %v210_v54 = vand.u32 2147483647, %v2291_v45  ;;  %v241_v58 = vsub.f32 0.0, %v209_v51 }
  0x11   : > { %1800 = vpow2.f32 %v257_v47  ;;  %v685_v57 = vadd.f32 %v684_v50, %v683_v49  ;;  %v193_v16 = vand.u32 2147483647, %v2298_v61  ;;  %v651_v17 = vmul.f32 %v2304_v9, %v2304_v9 }
  0x12   : > { %1802 = vpow2.f32 %v259_v53  ;;  %v242_v60 = vsub.f32 0.0, %v210_v54  ;;  %v293_v62 = vmul.f32 1.442695, %v241_v58  ;;  %v652_v19 = vmul.f32 %v2307_v15, %v2307_v15  ;;  %v2330_v54 = vld [vmem:[%s2237_s20 + $0x80] sm:$0xff] }
  0x13   : > { %v194_v21 = vand.u32 2147483647, %v2301_v7  ;;  %v686_v22 = vsel %vm573_vm0, %v651_v17, 0.0  ;;  %v225_v30 = vsub.f32 0.0, %v193_v16  ;;  %v173_v43 = vmax.f32 %v2228_v4, 0.0  ;;  %v76_v17 = vld [vmem:[%s2336_s23 + $0x88] sm:$0xff] }
  0x14   : > { %v295_v6 = vmul.f32 1.442695, %v242_v60  ;;  %v687_v25 = vadd.f32 %v686_v22, %v685_v57  ;;  %v688_v27 = vsel %vm573_vm0, %v652_v19, 0.0  ;;  %v174_v44 = vmax.f32 %v2231_v5, 0.0 }
  0x15   : > { %v1789_v52 = vpop.eup %1788  ;;  %v226_v39 = vsub.f32 0.0, %v194_v21  ;;  %v261_v48 = vmul.f32 1.442695, %v225_v30  ;;  %v211_v49 = vand.u32 2147483647, %v2320_v35  ;;  %v157_v58 = vmax.f32 %v2242_v8, 0.0 }
  0x16   : > { %v1791_v55 = vpop.eup %1790  ;;  %v333_v56 = vadd.f32 1.0, %v1789_v52  ;;  %v2317_v34 = vadd.f32 %v688_v27, %v687_v25  ;;  %v212_v52 = vand.u32 2147483647, %v2323_v40  ;;  %v175_v22 = vmax.f32 %v2260_v20, 0.0  ;;  %v59_v30 = vld [vmem:[%s2336_s23] sm:$0xff] }
  0x17   : > { %v334_v59 = vadd.f32 1.0, %v1791_v55  ;;  %v1793_v63 = vpop.eup %1792  ;;  %v263_v4 = vmul.f32 1.442695, %v226_v39  ;;  %v176_v27 = vmax.f32 %v2264_v24, 0.0  ;;  %v60_v39 = vld [vmem:[%s2336_s23 + $0x8] sm:$0xff]  ;;  %vm2115_vm1 = vmmov (%p49_p0), 0  }
  0x18   : > { %1804 = vlog2.f32 %v333_v56  ;;  %v1795_v11 = vpop.eup %1794  ;;  %v317_v14 = vadd.f32 1.0, %v1793_v63  ;;  %v2339_v56 = vld [vmem:[%s2237_s20 + $0x88] sm:$0xff]  ;;  %v75_v63 = vld [vmem:[%s2336_s23 + $0x80] sm:$0xff]  ;;  %v244_v21 = vsub.f32 0.0, %v212_v52  ;;  %vm962_vm2 = vcmask (%p49_p0), 253952  }
  0x19   : > { %1806 = vlog2.f32 %v334_v59  ;;  %v318_v18 = vadd.f32 1.0, %v1795_v11  ;;  %v1797_v23 = vpop.eup %1796  ;;  %v158_v59 = vmax.f32 %v2245_v10, 0.0  ;;  %vm1330_vm3 = vcmask (%p49_p0), 80896  }
  0x1a   : > { %1808 = vpow2.f32 %v293_v62  ;;  %v1799_v28 = vpop.eup %1798  ;;  %v335_v29 = vadd.f32 1.0, %v1797_v23  ;;  %vm1409_vm4 = vcmask (%p49_p0), 73728   ;;  %vm1525_vm5 = vcmask (%p49_p0), 74752  }
  0x1b   : > { %1810 = vpow2.f32 %v295_v6  ;;  %v1801_v31 = vpop.eup %1800  ;;  %v336_v33 = vadd.f32 1.0, %v1799_v28  ;;  %vm1541_vm6 = vcmask (%p49_p0), 0   ;;  %vm1545_vm7 = vcmask (%p49_p0), 8200  }
  0x1c   : > { %1812 = vlog2.f32 %v317_v14  ;;  %v319_v38 = vadd.f32 1.0, %v1801_v31  ;;  %v1803_v41 = vpop.eup %1802  ;;  %v243_v14 = vsub.f32 0.0, %v211_v49 }
  0x1d   : > { %1814 = vlog2.f32 %v318_v18  ;;  %v320_v47 = vadd.f32 1.0, %v1803_v41 }
  0x1e   : > { %1816 = vlog2.f32 %v335_v29 }
  0x1f   : > { %1818 = vlog2.f32 %v336_v33  ;;  %v297_v33 = vmul.f32 1.442695, %v243_v14 }
  0x20   : > { %1820 = vlog2.f32 %v319_v38 }
  0x21   : > { %1822 = vlog2.f32 %v320_v47  ;;  %v2366_v47 = vld [vmem:[%s2237_s20 + $0x90] sm:$0xff] }
  0x22   : > { %v1805_v46 = vpop.eup %1804  ;;  %1824 = vpow2.f32 %v261_v48  ;;  %v159_v48 = vmax.f32 %v2268_v26, 0.0 }
  0x23   : > { %v1807_v50 = vpop.eup %1806  ;;  %v382_v51 = vmul.f32 0.6931472, %v1805_v46  ;;  %1826 = vpow2.f32 %v263_v4  ;;  %v160_v4 = vmax.f32 %v2273_v32, 0.0 }
  0x24   : > { %v1809_v53 = vpop.eup %1808  ;;  %v384_v55 = vmul.f32 0.6931472, %v1807_v50 }
  0x25   : > { %v1811_v5 = vpop.eup %1810  ;;  %v2341_v57 = vadd.f32 %v382_v51, %v173_v43  ;;  %v337_v60 = vadd.f32 1.0, %v1809_v53  ;;  %v299_v43 = vmul.f32 1.442695, %v244_v21  ;;  %v77_v53 = vld [vmem:[%s2336_s23 + $0x90] sm:$0xff] }
  0x26   : > { %v1813_v62 = vpop.eup %1812  ;;  %v2346_v6 = vadd.f32 %v384_v55, %v174_v44  ;;  %v338_v11 = vadd.f32 1.0, %v1811_v5  ;;  %v2373_v55 = vld [vmem:[%s2237_s20 + $0x98] sm:$0xff] }
  0x27   : > { %v1815_v16 = vpop.eup %1814  ;;  %v461_v18 = vmul.f32 %v2341_v57, %v2330_v54  ;;  %v350_v19 = vmul.f32 0.6931472, %v1813_v62  ;;  %1828 = vlog2.f32 %v337_v60 }
  0x28   : > { %v462_v8 = vmul.f32 %v2346_v6, %v2339_v56  ;;  %v352_v10 = vmul.f32 0.6931472, %v1815_v16  ;;  %v1817_v28 = vpop.eup %1816  ;;  %1830 = vlog2.f32 %v338_v11  ;;  %v2382_v16 = vld [vmem:[%s2225_s17 + $0x30] sm:$0xff] }
  0x29   : > { %v2354_v23 = vadd.f32 %v461_v18, %v75_v63  ;;  %v413_v25 = vadd.f32 %v350_v19, %v157_v58  ;;  %v1819_v38 = vpop.eup %1818  ;;  %v386_v20 = vmul.f32 0.6931472, %v1817_v28  ;;  %v78_v63 = vld [vmem:[%s2336_s23 + $0x98] sm:$0xff]  ;;  %v61_v19 = vld [vmem:[%s2336_s23 + $0x10] sm:$0xff] }
  0x2a   : > { %v2357_v29 = vadd.f32 %v462_v8, %v76_v17  ;;  %v414_v31 = vadd.f32 %v352_v10, %v158_v59  ;;  %v1821_v44 = vpop.eup %1820  ;;  %v388_v50 = vmul.f32 0.6931472, %v1819_v38  ;;  %v195_v38 = vand.u32 2147483647, %v2382_v16 }
  0x2b   : > { %v445_v41 = vmul.f32 %v413_v25, %v2248_v12  ;;  %1832 = vlog2.f32 %v413_v25  ;;  %v2369_v51 = vadd.f32 %v386_v20, %v175_v22  ;;  %v1823_v12 = vpop.eup %1822  ;;  %v2393_v25 = vld [vmem:[%s2225_s17 + $0x38] sm:$0xff] }
  0x2c   : > { %v1664_v24 = vpack.c.bf16 %v2357_v29, %v2354_v23  ;;  %v446_v46 = vmul.f32 %v414_v31, %v2251_v13  ;;  %1834 = vlog2.f32 %v414_v31  ;;  %v354_v13 = vmul.f32 0.6931472, %v1821_v44  ;;  %v1825_v59 = vpop.eup %1824  ;;  %v62_v31 = vld [vmem:[%s2336_s23 + $0x18] sm:$0xff] }
  0x2d   : > { %v477_v49 = vadd.f32 %v445_v41, %v59_v30  ;;  %1836 = vpow2.f32 %v297_v33  ;;  %v2376_v58 = vadd.f32 %v388_v50, %v176_v27  ;;  %v463_v26 = vmul.f32 %v2369_v51, %v2366_v47  ;;  %v1827_v21 = vpop.eup %1826 }
  0x2e   : > { %1665 = vmatprep.subr.bf16.mxu0 %v1664_v24  ;;  %v478_v52 = vadd.f32 %v446_v46, %v60_v39  ;;  %1838 = vpow2.f32 %v299_v43  ;;  %v356_v11 = vmul.f32 0.6931472, %v1823_v12  ;;  %v415_v14 = vadd.f32 %v354_v13, %v159_v48 }
  0x2f   : > { %v752_v5 = vmul.f32 %v477_v49, %v477_v49  ;;  %v464_v17 = vmul.f32 %v2376_v58, %v2373_v55  ;;  %v2387_v18 = vadd.f32 %v463_v26, %v77_v53  ;;  %v321_v33 = vadd.f32 1.0, %v1825_v59  ;;  %v2408_v59 = vld [vmem:[%s2237_s20 + $0xa0] sm:$0xff] }
  0x30   : > { %v753_v60 = vmul.f32 %v478_v52, %v478_v52  ;;  %v1666_v62 = vpack.c.bf16 %v478_v52, %v477_v49  ;;  %v416_v10 = vadd.f32 %v356_v11, %v160_v4  ;;  %v447_v22 = vmul.f32 %v415_v14, %v2277_v36 }
  0x31   : > { %v784_v32 = vsel %vm573_vm0, %v752_v5, 0.0  ;;  %v1829_v27 = vpop.eup %1828  ;;  %v2395_v30 = vadd.f32 %v464_v17, %v78_v63  ;;  %1840 = vlog2.f32 %v415_v14  ;;  %v177_v43 = vmax.f32 %v2286_v42, 0.0 }
  0x32   : > { %v785_v8 = vsel %vm573_vm0, %v753_v60, 0.0  ;;  %1667 = vmatpush3.bf16.msra.mxu0 %v1666_v62  ;;  %v1831_v39 = vpop.eup %1830  ;;  %v448_v41 = vmul.f32 %v416_v10, %v2280_v37  ;;  %v479_v20 = vadd.f32 %v447_v22, %v61_v19  ;;  %v178_v24 = vmax.f32 %v2291_v45, 0.0  ;;  %v2415_v19 = vld [vmem:[%s2237_s20 + $0xa8] sm:$0xff] }
  0x33   : > { %v786_v28 = vadd.f32 %v785_v8, %v784_v32  ;;  %v1668_v36 = vpack.c.bf16 %v2395_v30, %v2387_v18  ;;  %v322_v46 = vadd.f32 1.0, %v1827_v21  ;;  %v196_v48 = vand.u32 2147483647, %v2393_v25 }
  0x34   : > { %v480_v12 = vadd.f32 %v448_v41, %v62_v31  ;;  %1842 = vlog2.f32 %v416_v10  ;;  %v754_v52 = vmul.f32 %v479_v20, %v479_v20  ;;  %v390_v53 = vmul.f32 0.6931472, %v1829_v27  ;;  %v79_v10 = vld [vmem:[%s2336_s23 + $0xa0] sm:$0xff] }
  0x35   : > { %v1833_v44 = vpop.eup %1832  ;;  %1669 = vmatprep.subr.bf16.mxu0 %v1668_v36  ;;  %1844 = vlog2.f32 %v321_v33  ;;  %v227_v42 = vsub.f32 0.0, %v195_v38  ;;  %v392_v11 = vmul.f32 0.6931472, %v1831_v39  ;;  %v228_v21 = vsub.f32 0.0, %v196_v48  ;;  %v2426_v38 = vld [vmem:[%s2237_s20 + $0x30] sm:$0xff] }
  0x36   : > { %v1835_v49 = vpop.eup %1834  ;;  %v510_v50 = vmul.f32 0.6931472, %v1833_v44  ;;  %v755_v5 = vmul.f32 %v480_v12, %v480_v12  ;;  %v787_v45 = vsel %vm573_vm0, %v754_v52, 0.0  ;;  %v1670_v26 = vpack.c.bf16 %v480_v12, %v479_v20  ;;  %v2431_v20 = vld [vmem:[%s2237_s20 + $0x38] sm:$0xff] }
  0x37   : > { %v512_v37 = vmul.f32 0.6931472, %v1835_v49  ;;  %v1837_v4 = vpop.eup %1836  ;;  %v788_v63 = vadd.f32 %v787_v45, %v786_v28  ;;  %v2411_v14 = vadd.f32 %v390_v53, %v177_v43  ;;  %1846 = vlog2.f32 %v322_v46  ;;  %v80_v28 = vld [vmem:[%s2336_s23 + $0xa8] sm:$0xff] }
  0x38   : > { %v574_v13 = vsel %vm573_vm0, %v510_v50, 0.0  ;;  %v1839_v60 = vpop.eup %1838  ;;  %v789_v17 = vsel %vm573_vm0, %v755_v5, 0.0  ;;  %1671 = vmatpush3.bf16.msra.mxu0 %v1670_v26  ;;  %v2420_v22 = vadd.f32 %v392_v11, %v178_v24  ;;  %v339_v31 = vadd.f32 1.0, %v1837_v4  ;;  %v2449_v5 = vld [vmem:[%s2225_s17 + $0xc8] sm:$0xff] }
  0x39   : > { %v575_v62 = vsel %vm573_vm0, %v512_v37, 0.0  ;;  %v2417_v8 = vadd.f32 %v789_v17, %v788_v63  ;;  %v465_v27 = vmul.f32 %v2411_v14, %v2408_v59  ;;  %v340_v33 = vadd.f32 1.0, %v1839_v60  ;;  %v2444_v37 = vld [vmem:[%s2225_s17 + $0xc0] sm:$0xff] }
  0x3a   : > { %v576_v32 = vadd.f32 %v575_v62, %v574_v13  ;;  %v265_v39 = vmul.f32 1.442695, %v227_v42  ;;  %v466_v41 = vmul.f32 %v2420_v22, %v2415_v19  ;;  %v653_v43 = vmul.f32 %v2426_v38, %v2426_v38 }
  0x3b   : > { %v1841_v44 = vpop.eup %1840  ;;  %v2435_v36 = vadd.f32 %v465_v27, %v79_v10  ;;  %1848 = vlog2.f32 %v339_v31  ;;  %v267_v24 = vmul.f32 1.442695, %v228_v21  ;;  %v654_v46 = vmul.f32 %v2431_v20, %v2431_v20  ;;  %v63_v27 = vld [vmem:[%s2336_s23 + $0x20] sm:$0xff] }
  0x3c   : > { %v514_v48 = vmul.f32 0.6931472, %v1841_v44  ;;  %v2439_v49 = vadd.f32 %v466_v41, %v80_v28  ;;  %1850 = vlog2.f32 %v340_v33  ;;  %v161_v12 = vmax.f32 %v2298_v61, 0.0 }
  0x3d   : > { %1852 = vpow2.f32 %v265_v39  ;;  %v690_v52 = vsel %vm573_vm0, %v653_v43, 0.0  ;;  %v692_v13 = vsel %vm573_vm0, %v654_v46, 0.0  ;;  %v162_v62 = vmax.f32 %v2301_v7, 0.0 }
  0x3e   : > { %v1843_v50 = vpop.eup %1842  ;;  %v577_v4 = vsel %vm573_vm0, %v514_v48, 0.0  ;;  %v1672_v26 = vpack.c.bf16 %v2439_v49, %v2435_v36  ;;  %1854 = vpow2.f32 %v267_v24  ;;  %v691_v63 = vadd.f32 %v690_v52, %v2317_v34  ;;  %v64_v24 = vld [vmem:[%s2336_s23 + $0x28] sm:$0xff] }
  0x3f   : > { %v1845_v53 = vpop.eup %1844  ;;  %v516_v42 = vmul.f32 0.6931472, %v1843_v50  ;;  %v578_v45 = vadd.f32 %v577_v4, %v576_v32  ;;  %v213_v11 = vand.u32 2147483647, %v2444_v37  ;;  %v214_v32 = vand.u32 2147483647, %v2449_v5 }
  0x40   : > { %v358_v60 = vmul.f32 0.6931472, %v1845_v53  ;;  %1673 = vmatprep.subr.bf16.mxu0 %v1672_v26  ;;  %v2461_v31 = vadd.f32 %v692_v13, %v691_v63  ;;  %v179_v41 = vmax.f32 %v2320_v35, 0.0  ;;  %v180_v48 = vmax.f32 %v2323_v40, 0.0  ;;  %v2469_v53 = vld [vmem:[%s2225_s17 + $0x40] sm:$0xff]  ;;  %v2472_v35 = vld [vmem:[%s2237_s20 + $0xb0] sm:$0xff] }
  0x41   : > { %v579_v61 = vsel %vm573_vm0, %v516_v42, 0.0  ;;  %v1847_v17 = vpop.eup %1846  ;;  %v245_v33 = vsub.f32 0.0, %v213_v11  ;;  %v246_v34 = vsub.f32 0.0, %v214_v32  ;;  %v2475_v26 = vld [vmem:[%s2237_s20 + $0xb8] sm:$0xff] }
  0x42   : > { %v2457_v21 = vadd.f32 %v579_v61, %v578_v45  ;;  %v417_v10 = vadd.f32 %v358_v60, %v161_v12  ;;  %v360_v28 = vmul.f32 0.6931472, %v1847_v17  ;;  %v2480_v60 = vld [vmem:[%s2225_s17 + $0x48] sm:$0xff]  ;;  %v197_v17 = vand.u32 2147483647, %v2469_v53 }
  0x43   : > { %v301_v43 = vmul.f32 1.442695, %v245_v33  ;;  %v303_v50 = vmul.f32 1.442695, %v246_v34 }
  0x44   : > { %v449_v7 = vmul.f32 %v417_v10, %v2304_v9  ;;  %1856 = vlog2.f32 %v417_v10  ;;  %v418_v39 = vadd.f32 %v360_v28, %v162_v62  ;;  %v81_v62 = vld [vmem:[%s2336_s23 + $0xb0] sm:$0xff]  ;;  %v82_v28 = vld [vmem:[%s2336_s23 + $0xb8] sm:$0xff] }
  0x45   : > { %v1849_v44 = vpop.eup %1848 }
  0x46   : > { %v481_v46 = vadd.f32 %v449_v7, %v63_v27  ;;  %v1851_v12 = vpop.eup %1850  ;;  %v450_v52 = vmul.f32 %v418_v39, %v2307_v15  ;;  %1858 = vlog2.f32 %v418_v39  ;;  %v394_v9 = vmul.f32 0.6931472, %v1849_v44 }
  0x47   : > { %v1853_v42 = vpop.eup %1852  ;;  %v396_v13 = vmul.f32 0.6931472, %v1851_v12  ;;  %1860 = vpow2.f32 %v301_v43  ;;  %v198_v39 = vand.u32 2147483647, %v2480_v60  ;;  %v229_v44 = vsub.f32 0.0, %v197_v17  ;;  %v2502_v12 = vld [vmem:[%s2237_s20 + $0x40] sm:$0xff] }
  0x48   : > { %v756_v4 = vmul.f32 %v481_v46, %v481_v46  ;;  %v482_v45 = vadd.f32 %v450_v52, %v64_v24  ;;  %v2477_v40 = vadd.f32 %v394_v9, %v179_v41  ;;  %1862 = vpow2.f32 %v303_v50  ;;  %v1855_v15 = vpop.eup %1854 }
  0x49   : > { %v2484_v63 = vadd.f32 %v396_v13, %v180_v48  ;;  %v323_v11 = vadd.f32 1.0, %v1853_v42  ;;  %v324_v34 = vadd.f32 1.0, %v1855_v15  ;;  %v230_v48 = vsub.f32 0.0, %v198_v39  ;;  %v2507_v42 = vld [vmem:[%s2237_s20 + $0x48] sm:$0xff] }
  0x4a   : > { %v791_v61 = vsel %vm573_vm0, %v756_v4, 0.0  ;;  %v757_v10 = vmul.f32 %v482_v45, %v482_v45  ;;  %v1674_v27 = vpack.c.bf16 %v482_v45, %v481_v46  ;;  %v467_v33 = vmul.f32 %v2477_v40, %v2472_v35 }
  0x4b   : > { %v792_v32 = vadd.f32 %v791_v61, %v2417_v8  ;;  %v468_v7 = vmul.f32 %v2484_v63, %v2475_v26  ;;  %1864 = vlog2.f32 %v323_v11  ;;  %v269_v52 = vmul.f32 1.442695, %v229_v44 }
  0x4c   : > { %v793_v41 = vsel %vm573_vm0, %v757_v10, 0.0  ;;  %1675 = vmatpush3.bf16.msra.mxu0 %v1674_v27  ;;  %v2495_v43 = vadd.f32 %v467_v33, %v81_v62  ;;  %1866 = vlog2.f32 %v324_v34  ;;  %v271_v4 = vmul.f32 1.442695, %v230_v48  ;;  %v2516_v10 = vld [vmem:[%s2225_s17 + $0xd0] sm:$0xff] }
  0x4d   : > { %v2497_v24 = vadd.f32 %v793_v41, %v792_v32  ;;  %v2499_v46 = vadd.f32 %v468_v7, %v82_v28  ;;  %v655_v13 = vmul.f32 %v2502_v12, %v2502_v12  ;;  %1868 = vpow2.f32 %v269_v52  ;;  %v2519_v32 = vld [vmem:[%s2225_s17 + $0xd8] sm:$0xff]  ;;  %v2530_v48 = vld [vmem:[%s2225_s17 + $0x50] sm:$0xff] }
  0x4e   : > { %3324 = vst [vmem:[#allocation9_spill] sm:$0xff] %v2495_v43  ;;  %v1857_v8 = vpop.eup %1856  ;;  %v656_v61 = vmul.f32 %v2507_v42, %v2507_v42  ;;  %1870 = vpow2.f32 %v271_v4  ;;  %v215_v44 = vand.u32 2147483647, %v2516_v10  ;;  %v163_v52 = vmax.f32 %v2382_v16, 0.0 }
  0x4f   : > { %3325 = vst [vmem:[#allocation10_spill] sm:$0xff] %v2499_v46  ;;  %v518_v50 = vmul.f32 0.6931472, %v1857_v8  ;;  %v1676_v9 = vpack.c.bf16 %v2499_v46, %v2495_v43  ;;  %v694_v33 = vsel %vm573_vm0, %v655_v13, 0.0  ;;  %v216_v8 = vand.u32 2147483647, %v2519_v32 }
  0x50   : > { %v1859_v45 = vpop.eup %1858  ;;  %v696_v7 = vsel %vm573_vm0, %v656_v61, 0.0  ;;  %v199_v61 = vand.u32 2147483647, %v2530_v48  ;;  %v165_v46 = vmax.f32 %v2469_v53, 0.0 }
  0x51   : > { %v581_v15 = vsel %vm573_vm0, %v518_v50, 0.0  ;;  %v1861_v62 = vpop.eup %1860  ;;  %v520_v11 = vmul.f32 0.6931472, %v1859_v45  ;;  %1677 = vmatprep.subr.bf16.mxu0 %v1676_v9  ;;  %v247_v9 = vsub.f32 0.0, %v215_v44  ;;  %v248_v4 = vsub.f32 0.0, %v216_v8 }
  0x52   : > { %v582_v17 = vadd.f32 %v581_v15, %v2457_v21  ;;  %v1863_v27 = vpop.eup %1862  ;;  %v341_v28 = vadd.f32 1.0, %v1861_v62  ;;  %v695_v21 = vadd.f32 %v694_v33, %v2461_v31  ;;  %v164_v45 = vmax.f32 %v2393_v25, 0.0  ;;  %v2535_v31 = vld [vmem:[%s2225_s17 + $0x58] sm:$0xff]  ;;  %v2538_v15 = vld [vmem:[%s2237_s20 + $0x50] sm:$0xff] }
  0x53   : > { %v583_v34 = vsel %vm573_vm0, %v520_v11, 0.0  ;;  %v342_v39 = vadd.f32 1.0, %v1863_v27  ;;  %v182_v27 = vmax.f32 %v2449_v5, 0.0  ;;  %v307_v33 = vmul.f32 1.442695, %v248_v4  ;;  %v65_v5 = vld [vmem:[%s2336_s23 + $0x30] sm:$0xff] }
  0x54   : > { %v2525_v41 = vadd.f32 %v583_v34, %v582_v17  ;;  %1872 = vlog2.f32 %v341_v28  ;;  %v697_v50 = vadd.f32 %v696_v7, %v695_v21  ;;  %v181_v17 = vmax.f32 %v2444_v37, 0.0  ;;  %v2544_v7 = vld [vmem:[%s2237_s20 + $0x58] sm:$0xff] }
  0x55   : > { %1874 = vlog2.f32 %v342_v39  ;;  %v1865_v13 = vpop.eup %1864  ;;  %v305_v28 = vmul.f32 1.442695, %v247_v9  ;;  %v231_v25 = vsub.f32 0.0, %v199_v61  ;;  %v657_v34 = vmul.f32 %v2538_v15, %v2538_v15 }
  0x56   : > { %v1867_v62 = vpop.eup %1866  ;;  %v362_v11 = vmul.f32 0.6931472, %v1865_v13  ;;  %v200_v44 = vand.u32 2147483647, %v2535_v31  ;;  %v658_v37 = vmul.f32 %v2544_v7, %v2544_v7 }
  0x57   : > { %v364_v16 = vmul.f32 0.6931472, %v1867_v62  ;;  %v1869_v39 = vpop.eup %1868  ;;  %1876 = vpow2.f32 %v305_v28  ;;  %v273_v4 = vmul.f32 1.442695, %v231_v25  ;;  %v66_v62 = vld [vmem:[%s2336_s23 + $0x38] sm:$0xff] }
  0x58   : > { %v419_v21 = vadd.f32 %v362_v11, %v163_v52  ;;  %v1871_v8 = vpop.eup %1870  ;;  %v325_v13 = vadd.f32 1.0, %v1869_v39  ;;  %1878 = vpow2.f32 %v307_v33  ;;  %v232_v1 = vsub.f32 0.0, %v200_v44  ;;  %v2561_v44 = vld [vmem:[%s2237_s20 + $0xc0] sm:$0xff] }
  0x59   : > { %v420_v9 = vadd.f32 %v364_v16, %v164_v45  ;;  %v326_v0 = vadd.f32 1.0, %v1871_v8  ;;  %v698_v11 = vsel %vm573_vm0, %v657_v34, 0.0  ;;  %v700_v28 = vsel %vm573_vm0, %v658_v37, 0.0 }
  0x5a   : > { %v451_v61 = vmul.f32 %v419_v21, %v2426_v38  ;;  %1880 = vlog2.f32 %v419_v21  ;;  %v275_v16 = vmul.f32 1.442695, %v232_v1  ;;  %v699_v33 = vadd.f32 %v698_v11, %v697_v50  ;;  %v2558_v21 = vld [vmem:[%s2225_s17 + $0xe0] sm:$0xff]  ;;  %v2571_v50 = vld [vmem:[%s2225_s17 + $0xe8] sm:$0xff] }
  0x5b   : > { %v452_v52 = vmul.f32 %v420_v9, %v2431_v20  ;;  %1882 = vlog2.f32 %v420_v9  ;;  %v217_v9 = vand.u32 2147483647, %v2558_v21  ;;  %v218_v11 = vand.u32 2147483647, %v2571_v50 }
  0x5c   : > { %v483_v45 = vadd.f32 %v451_v61, %v65_v5  ;;  %1884 = vlog2.f32 %v325_v13  ;;  %v2563_v37 = vadd.f32 %v700_v28, %v699_v33  ;;  %v2566_v5 = vld [vmem:[%s2237_s20 + $0xc8] sm:$0xff] }
  0x5d   : > { %v484_v25 = vadd.f32 %v452_v52, %v66_v62  ;;  %1886 = vlog2.f32 %v326_v0  ;;  %v249_v28 = vsub.f32 0.0, %v217_v9 }
  0x5e   : > { %v1873_v2 = vpop.eup %1872  ;;  %v758_v20 = vmul.f32 %v483_v45, %v483_v45  ;;  %1888 = vpow2.f32 %v273_v4  ;;  %v84_v4 = vld [vmem:[%s2336_s23 + $0xc8] sm:$0xff] }
  0x5f   : > { %v1875_v38 = vpop.eup %1874  ;;  %v398_v39 = vmul.f32 0.6931472, %v1873_v2  ;;  %v1678_v8 = vpack.c.bf16 %v484_v25, %v483_v45  ;;  %1890 = vpow2.f32 %v275_v16  ;;  %v83_v2 = vld [vmem:[%s2336_s23 + $0xc0] sm:$0xff]  ;;  %v759_v13 = vmul.f32 %v484_v25, %v484_v25 }
  0x60   : > { %v400_v34 = vmul.f32 0.6931472, %v1875_v38  ;;  %v795_v62 = vsel %vm573_vm0, %v758_v20, 0.0  ;;  %v309_v20 = vmul.f32 1.442695, %v249_v28  ;;  %v183_v28 = vmax.f32 %v2516_v10, 0.0 }
  0x61   : > { %v2568_v1 = vadd.f32 %v398_v39, %v181_v17  ;;  %1679 = vmatpush3.bf16.msra.mxu0 %v1678_v8  ;;  %v1877_v52 = vpop.eup %1876  ;;  %v796_v38 = vadd.f32 %v795_v62, %v2497_v24  ;;  %v797_v3 = vsel %vm573_vm0, %v759_v13, 0.0  ;;  %v250_v24 = vsub.f32 0.0, %v218_v11  ;;  %v68_v10 = vld [vmem:[%s2336_s23 + $0x48] sm:$0xff] }
  0x62   : > { %v2574_v0 = vadd.f32 %v400_v34, %v182_v27  ;;  %v1879_v45 = vpop.eup %1878  ;;  %v343_v16 = vadd.f32 1.0, %v1877_v52  ;;  %v2595_v52 = vld [vmem:[%s2225_s17 + $0x60] sm:$0xff] }
  0x63   : > { %3326 = vst [vmem:[#allocation11_spill] sm:$0xff] %v2568_v1  ;;  %v469_v61 = vmul.f32 %v2568_v1, %v2561_v44  ;;  %v344_v39 = vadd.f32 1.0, %v1879_v45  ;;  %v798_v13 = vadd.f32 %v797_v3, %v796_v38  ;;  %v184_v45 = vmax.f32 %v2519_v32, 0.0  ;;  %v2605_v38 = vld [vmem:[%s2237_s20 + $0x60] sm:$0xff] }
  0x64   : > { %3327 = vst [vmem:[#allocation12_spill] sm:$0xff] %v2574_v0  ;;  %v470_v17 = vmul.f32 %v2574_v0, %v2566_v5  ;;  %v1881_v33 = vpop.eup %1880  ;;  %1892 = vlog2.f32 %v343_v16  ;;  %v2600_v16 = vld [vmem:[%s2225_s17 + $0x68] sm:$0xff]  ;;  %v311_v3 = vmul.f32 1.442695, %v250_v24 }
  0x65   : > { %v2584_v27 = vadd.f32 %v469_v61, %v83_v2  ;;  %v1883_v34 = vpop.eup %1882  ;;  %v522_v8 = vmul.f32 0.6931472, %v1881_v33  ;;  %v166_v61 = vmax.f32 %v2480_v60, 0.0  ;;  %1894 = vlog2.f32 %v344_v39  ;;  %v67_v39 = vld [vmem:[%s2336_s23 + $0x40] sm:$0xff] }
  0x66   : > { %v2587_v25 = vadd.f32 %v470_v17, %v84_v4  ;;  %v1885_v9 = vpop.eup %1884  ;;  %1896 = vpow2.f32 %v309_v20  ;;  %v524_v33 = vmul.f32 0.6931472, %v1883_v34  ;;  %v659_v34 = vmul.f32 %v2605_v38, %v2605_v38  ;;  %v2711_v1 = vld.sshfl [vmem:[%s859_s27] sm:$0x33 pattern:$0x76325410] }
  0x67   : > { %3328 = vst [vmem:[#allocation13_spill] sm:$0xff] %v2584_v27  ;;  %v1887_v62 = vpop.eup %1886  ;;  %v366_v4 = vmul.f32 0.6931472, %v1885_v9  ;;  %v585_v11 = vsel %vm573_vm0, %v522_v8, 0.0 }
  0x68   : > { %3329 = vst [vmem:[#allocation14_spill] sm:$0xff] %v2587_v25  ;;  %v1680_v2 = vpack.c.bf16 %v2587_v25, %v2584_v27  ;;  %v1889_v17 = vpop.eup %1888  ;;  %v368_v53 = vmul.f32 0.6931472, %v1887_v62  ;;  %v202_v62 = vand.u32 2147483647, %v2600_v16  ;;  %v587_v24 = vsel %vm573_vm0, %v524_v33, 0.0 }
  0x69   : > { %v1891_v60 = vpop.eup %1890  ;;  %v421_v20 = vadd.f32 %v366_v4, %v165_v46  ;;  %v327_v9 = vadd.f32 1.0, %v1889_v17  ;;  %v586_v46 = vadd.f32 %v585_v11, %v2525_v41  ;;  %v2617_v17 = vld [vmem:[%s2237_s20 + $0x68] sm:$0xff] }
  0x6a   : > { %1681 = vmatprep.subr.bf16.mxu0 %v1680_v2  ;;  %v422_v25 = vadd.f32 %v368_v53, %v166_v61  ;;  %v328_v27 = vadd.f32 1.0, %v1891_v60  ;;  %v201_v2 = vand.u32 2147483647, %v2595_v52  ;;  %v234_v53 = vsub.f32 0.0, %v202_v62 }
  0x6b   : > { %v453_v32 = vmul.f32 %v421_v20, %v2502_v12  ;;  %1898 = vlog2.f32 %v421_v20  ;;  %v660_v20 = vmul.f32 %v2617_v17, %v2617_v17 }
  0x6c   : > { %v454_v8 = vmul.f32 %v422_v25, %v2507_v42  ;;  %1900 = vlog2.f32 %v422_v25  ;;  %v233_v61 = vsub.f32 0.0, %v201_v2  ;;  %v279_v42 = vmul.f32 1.442695, %v234_v53  ;;  %v2637_v53 = vld [vmem:[%s2225_s17 + $0xf8] sm:$0xff] }
  0x6d   : > { %v485_v4 = vadd.f32 %v453_v32, %v67_v39  ;;  %1902 = vlog2.f32 %v327_v9  ;;  %v702_v25 = vsel %vm573_vm0, %v659_v34, 0.0 }
  0x6e   : > { %v486_v12 = vadd.f32 %v454_v8, %v68_v10  ;;  %1904 = vlog2.f32 %v328_v27  ;;  %v277_v60 = vmul.f32 1.442695, %v233_v61  ;;  %v1893_v0 = vpop.eup %1892  ;;  %v2624_v10 = vld [vmem:[%s2237_s20 + $0xd0] sm:$0xff]  ;;  %v2629_v8 = vld [vmem:[%s2237_s20 + $0xd8] sm:$0xff] }
  0x6f   : > { %v760_v41 = vmul.f32 %v485_v4, %v485_v4  ;;  %1906 = vpow2.f32 %v311_v3  ;;  %v1895_v33 = vpop.eup %1894  ;;  %v402_v9 = vmul.f32 0.6931472, %v1893_v0  ;;  %v703_v3 = vadd.f32 %v702_v25, %v2563_v37 }
  0x70   : > { %v761_v11 = vmul.f32 %v486_v12, %v486_v12  ;;  %v1682_v39 = vpack.c.bf16 %v486_v12, %v485_v4  ;;  %1908 = vpow2.f32 %v277_v60  ;;  %v1897_v27 = vpop.eup %1896  ;;  %v404_v32 = vmul.f32 0.6931472, %v1895_v33  ;;  %v2634_v4 = vld [vmem:[%s2225_s17 + $0xf0] sm:$0xff] }
  0x71   : > { %v799_v2 = vsel %vm573_vm0, %v760_v41, 0.0  ;;  %1910 = vpow2.f32 %v279_v42  ;;  %v2631_v61 = vadd.f32 %v402_v9, %v183_v28  ;;  %v345_v0 = vadd.f32 1.0, %v1897_v27  ;;  %v85_v60 = vld [vmem:[%s2336_s23 + $0xd0] sm:$0xff]  ;;  %v86_v42 = vld [vmem:[%s2336_s23 + $0xd8] sm:$0xff] }
  0x72   : > { %v800_v62 = vadd.f32 %v799_v2, %v798_v13  ;;  %v801_v34 = vsel %vm573_vm0, %v761_v11, 0.0  ;;  %1683 = vmatpush3.bf16.msra.mxu0 %v1682_v39  ;;  %v2641_v12 = vmul.f32 %v2330_v54, %v2330_v54  ;;  %v2644_v41 = vadd.f32 %v404_v32, %v184_v45 }
  0x73   : > { %3330 = vst [vmem:[#allocation15_spill] sm:$0xff] %v2631_v61  ;;  %v704_v37 = vsel %vm573_vm0, %v660_v20, 0.0  ;;  %v2649_v13 = vmul.f32 %v2339_v56, %v2339_v56  ;;  %v471_v25 = vmul.f32 %v2631_v61, %v2624_v10  ;;  %v588_v54 = vadd.f32 %v587_v24, %v586_v46 }
  0x74   : > { %3331 = vst [vmem:[#allocation16_spill] sm:$0xff] %v2644_v41  ;;  %v2651_v28 = vadd.f32 %v801_v34, %v800_v62  ;;  %v2656_v33 = vadd.f32 %v704_v37, %v703_v3  ;;  %v472_v45 = vmul.f32 %v2644_v41, %v2629_v8  ;;  %v219_v39 = vand.u32 2147483647, %v2634_v4  ;;  %v2685_v41 = vld [vmem:[%s2225_s17 + $0x78] sm:$0xff] }
  0x75   : > { %v1899_v11 = vpop.eup %1898  ;;  %v220_v20 = vand.u32 2147483647, %v2637_v53  ;;  %v2662_v27 = vadd.f32 %v471_v25, %v85_v60  ;;  %v167_v2 = vmax.f32 %v2530_v48, 0.0  ;;  %1912 = vlog2.f32 %v345_v0 }
  0x76   : > { %v1901_v9 = vpop.eup %1900  ;;  %v526_v56 = vmul.f32 0.6931472, %v1899_v11  ;;  %v2665_v62 = vadd.f32 %v472_v45, %v86_v42  ;;  %v251_v46 = vsub.f32 0.0, %v219_v39  ;;  %v2669_v37 = vmul.f32 %v2366_v47, %v2366_v47  ;;  %v2681_v47 = vld [vmem:[%s2225_s17 + $0x70] sm:$0xff] }
  0x77   : > { %3332 = vst [vmem:[#allocation17_spill] sm:$0xff] %v2662_v27  ;;  %v1903_v32 = vpop.eup %1902  ;;  %v528_v3 = vmul.f32 0.6931472, %v1901_v9  ;;  %v252_v24 = vsub.f32 0.0, %v220_v20  ;;  %v168_v25 = vmax.f32 %v2535_v31, 0.0  ;;  %v2675_v42 = vmul.f32 %v2373_v55, %v2373_v55 }
  0x78   : > { %3333 = vst [vmem:[#allocation18_spill] sm:$0xff] %v2665_v62  ;;  %v1905_v34 = vpop.eup %1904  ;;  %v589_v60 = vsel %vm573_vm0, %v526_v56, 0.0  ;;  %v370_v48 = vmul.f32 0.6931472, %v1903_v32  ;;  %v1684_v39 = vpack.c.bf16 %v2665_v62, %v2662_v27  ;;  %v185_v31 = vmax.f32 %v2558_v21, 0.0  ;;  %v2693_v21 = vld [vmem:[%s2237_s20 + $0x70] sm:$0xff] }
  0x79   : > { %v1907_v0 = vpop.eup %1906  ;;  %v590_v11 = vadd.f32 %v589_v60, %v588_v54  ;;  %v591_v45 = vsel %vm573_vm0, %v528_v3, 0.0  ;;  %v372_v9 = vmul.f32 0.6931472, %v1905_v34  ;;  %v69_v3 = vld [vmem:[%s2336_s23 + $0x50] sm:$0xff]  ;;  %v313_v62 = vmul.f32 1.442695, %v251_v46 }
  0x7a   : > { %v1909_v20 = vpop.eup %1908  ;;  %v423_v56 = vadd.f32 %v370_v48, %v167_v2  ;;  %v346_v32 = vadd.f32 1.0, %v1907_v0  ;;  %1685 = vmatprep.subr.bf16.mxu0 %v1684_v39  ;;  %v315_v27 = vmul.f32 1.442695, %v252_v24  ;;  %v70_v48 = vld [vmem:[%s2336_s23 + $0x58] sm:$0xff]  ;;  %v203_v43 = vand.u32 2147483647, %v2681_v47 }
  0x7b   : > { %v1911_v55 = vpop.eup %1910  ;;  %v2688_v54 = vadd.f32 %v591_v45, %v590_v11  ;;  %v329_v60 = vadd.f32 1.0, %v1909_v20  ;;  %v424_v61 = vadd.f32 %v372_v9, %v168_v25  ;;  %v2697_v0 = vld [vmem:[%s2237_s20 + $0x78] sm:$0xff]  ;;  %v204_v11 = vand.u32 2147483647, %v2685_v41 }
  0x7c   : > { %v455_v2 = vmul.f32 %v423_v56, %v2538_v15  ;;  %1914 = vlog2.f32 %v423_v56  ;;  %v330_v34 = vadd.f32 1.0, %v1911_v55  ;;  %v661_v45 = vmul.f32 %v2693_v21, %v2693_v21 }
  0x7d   : > { %1916 = vlog2.f32 %v346_v32  ;;  %v456_v15 = vmul.f32 %v424_v61, %v2544_v7  ;;  %v662_v24 = vmul.f32 %v2697_v0, %v2697_v0  ;;  %v235_v25 = vsub.f32 0.0, %v203_v43 }
  0x7e   : > { %v487_v46 = vadd.f32 %v455_v2, %v69_v3  ;;  %1918 = vlog2.f32 %v424_v61  ;;  %v236_v39 = vsub.f32 0.0, %v204_v11  ;;  %v706_v20 = vsel %vm573_vm0, %v661_v45, 0.0  ;;  %v2715_v11 = vld [vmem:[%s2237_s20 + $0xe0] sm:$0xff] }
  0x7f   : > { %1920 = vlog2.f32 %v329_v60  ;;  %v1913_v9 = vpop.eup %1912  ;;  %v488_v56 = vadd.f32 %v456_v15, %v70_v48  ;;  %v707_v55 = vadd.f32 %v706_v20, %v2656_v33  ;;  %v281_v61 = vmul.f32 1.442695, %v235_v25 }
  0x80   : > { %v762_v32 = vmul.f32 %v487_v46, %v487_v46  ;;  %1922 = vlog2.f32 %v330_v34  ;;  %v406_v7 = vmul.f32 0.6931472, %v1913_v9  ;;  %v283_v3 = vmul.f32 1.442695, %v236_v39 }
  0x81   : > { %1924 = vpow2.f32 %v313_v62  ;;  %v763_v2 = vmul.f32 %v488_v56, %v488_v56  ;;  %v1686_v60 = vpack.c.bf16 %v488_v56, %v487_v46  ;;  %v708_v33 = vsel %vm573_vm0, %v662_v24, 0.0  ;;  %v87_v62 = vld [vmem:[%s2336_s23 + $0xe0] sm:$0xff] }
  0x82   : > { %v803_v43 = vsel %vm573_vm0, %v762_v32, 0.0  ;;  %1926 = vpow2.f32 %v315_v27  ;;  %v2718_v45 = vadd.f32 %v406_v7, %v185_v31  ;;  %v709_v15 = vadd.f32 %v708_v33, %v707_v55 }
  0x83   : > { %v804_v48 = vadd.f32 %v803_v43, %v2651_v28  ;;  %1928 = vpow2.f32 %v281_v61  ;;  %v805_v34 = vsel %vm573_vm0, %v763_v2, 0.0  ;;  %1687 = vmatpush3.bf16.msra.mxu0 %v1686_v60  ;;  %v869_v25 = vcombine.high %v2711_v1, %v2711_v1  ;;  %v2745_v43 = vld [vmem:[%s2237_s20 + $0xe8] sm:$0xff] }
  0x84   : > { %1930 = vpow2.f32 %v283_v3  ;;  %v473_v27 = vmul.f32 %v2718_v45, %v2715_v11  ;;  %v710_v31 = vsel %vm573_vm0, %v2641_v12, 0.0  ;;  %v186_v24 = vmax.f32 %v2571_v50, 0.0 }
  0x85   : > { %v2725_v46 = vadd.f32 %v805_v34, %v804_v48  ;;  %936 = vmatprep.mubr.f32.mxu0 %v869_v25  ;;  %v712_v20 = vsel %vm573_vm0, %v2649_v13, 0.0  ;;  %v667_v9 = vmul.f32 %v2408_v59, %v2408_v59  ;;  %v714_v7 = vsel %vm573_vm0, %v2669_v37, 0.0 }
  0x86   : > { %v1915_v28 = vpop.eup %1914  ;;  %v2736_v32 = vadd.f32 %v473_v27, %v87_v62  ;;  %v716_v12 = vsel %vm573_vm0, %v2675_v42, 0.0  ;;  %v169_v50 = vmax.f32 %v2595_v52, 0.0  ;;  %v170_v59 = vmax.f32 %v2600_v16, 0.0  ;;  %v88_v27 = vld [vmem:[%s2336_s23 + $0xe8] sm:$0xff] }
  0x87   : > { %v1917_v39 = vpop.eup %1916  ;;  %v530_v56 = vmul.f32 0.6931472, %v1915_v28  ;;  %v711_v60 = vadd.f32 %v710_v31, %v709_v15  ;;  %v668_v37 = vmul.f32 %v2415_v19, %v2415_v19  ;;  %v718_v62 = vsel %vm573_vm0, %v667_v9, 0.0 }
  0x88   : > { %v1919_v55 = vpop.eup %1918  ;;  %v408_v61 = vmul.f32 0.6931472, %v1917_v39 }
  0x89   : > { %v1921_v3 = vpop.eup %1920  ;;  %v532_v2 = vmul.f32 0.6931472, %v1919_v55  ;;  %v593_v13 = vsel %vm573_vm0, %v530_v56, 0.0  ;;  %v713_v16 = vadd.f32 %v712_v20, %v711_v60  ;;  %v669_v56 = vmul.f32 %v2472_v35, %v2472_v35  ;;  %v71_v55 = vld [vmem:[%s2336_s23 + $0x60] sm:$0xff]  ;;  %v72_v20 = vld [vmem:[%s2336_s23 + $0x68] sm:$0xff] }
  0x8a   : > { %v1923_v48 = vpop.eup %1922  ;;  %v594_v33 = vadd.f32 %v593_v13, %v2688_v54  ;;  %v2751_v42 = vadd.f32 %v408_v61, %v186_v24  ;;  %v374_v34 = vmul.f32 0.6931472, %v1921_v3 }
  0x8b   : > { %v1925_v52 = vpop.eup %1924  ;;  %v595_v25 = vsel %vm573_vm0, %v532_v2, 0.0  ;;  %v376_v28 = vmul.f32 0.6931472, %v1923_v48  ;;  %v715_v3 = vadd.f32 %v714_v7, %v713_v16  ;;  %v670_v7 = vmul.f32 %v2475_v26, %v2475_v26 }
  0x8c   : > { %v1927_v15 = vpop.eup %1926  ;;  %v2756_v31 = vadd.f32 %v595_v25, %v594_v33  ;;  %v474_v19 = vmul.f32 %v2751_v42, %v2745_v43  ;;  %v425_v54 = vadd.f32 %v374_v34, %v169_v50  ;;  %v347_v39 = vadd.f32 1.0, %v1925_v52 }
  0x8d   : > { %v1929_v24 = vpop.eup %1928  ;;  %v426_v9 = vadd.f32 %v376_v28, %v170_v59  ;;  %v348_v61 = vadd.f32 1.0, %v1927_v15  ;;  %v717_v34 = vadd.f32 %v716_v12, %v715_v3  ;;  %v720_v52 = vsel %vm573_vm0, %v668_v37, 0.0 }
  0x8e   : > { %v1931_v2 = vpop.eup %1930  ;;  %v2763_v13 = vadd.f32 %v474_v19, %v88_v27  ;;  %v457_v60 = vmul.f32 %v425_v54, %v2605_v38  ;;  %1932 = vlog2.f32 %v425_v54  ;;  %v331_v48 = vadd.f32 1.0, %v1929_v24 }
  0x8f   : > { %v458_v33 = vmul.f32 %v426_v9, %v2617_v17  ;;  %1934 = vlog2.f32 %v426_v9  ;;  %v332_v50 = vadd.f32 1.0, %v1931_v2  ;;  %v719_v38 = vadd.f32 %v718_v62, %v717_v34 }
  0x90   : > { %v1688_v35 = vpack.c.bf16 %v2763_v13, %v2736_v32  ;;  %v489_v59 = vadd.f32 %v457_v60, %v71_v55  ;;  %1936 = vlog2.f32 %v347_v39  ;;  %v722_v27 = vsel %vm573_vm0, %v669_v56, 0.0 }
  0x91   : > { %v490_v25 = vadd.f32 %v458_v33, %v72_v20  ;;  %1938 = vlog2.f32 %v348_v61  ;;  %v671_v12 = vmul.f32 %v2561_v44, %v2561_v44  ;;  %v672_v16 = vmul.f32 %v2566_v5, %v2566_v5 }
  0x92   : > { %1689 = vmatprep.subr.bf16.mxu0 %v1688_v35  ;;  %v764_v17 = vmul.f32 %v489_v59, %v489_v59  ;;  %1940 = vlog2.f32 %v331_v48  ;;  %v721_v26 = vadd.f32 %v720_v52, %v719_v38  ;;  %v724_v19 = vsel %vm573_vm0, %v670_v7, 0.0  ;;  %v156_v38 = vld [vmem:[%s2237_s20 + $0xf8] sm:$0xff] }
  0x93   : > { %v765_v37 = vmul.f32 %v490_v25, %v490_v25  ;;  %v1690_v28 = vpack.c.bf16 %v490_v25, %v489_v59  ;;  %1942 = vlog2.f32 %v332_v50  ;;  %v673_v62 = vmul.f32 %v2624_v10, %v2624_v10  ;;  %v155_v59 = vld [vmem:[%s2237_s20 + $0xf0] sm:$0xff] }
  0x94   : > { %v807_v15 = vsel %vm573_vm0, %v764_v17, 0.0  ;;  %v723_v44 = vadd.f32 %v722_v27, %v721_v26  ;;  %1944 = vlog2.f32 %v2341_v57  ;;  %v726_v24 = vsel %vm573_vm0, %v671_v12, 0.0 }
  0x95   : > { %v808_v54 = vadd.f32 %v807_v15, %v2725_v46  ;;  %v809_v39 = vsel %vm573_vm0, %v765_v37, 0.0  ;;  %1691 = vmatpush3.bf16.msra.mxu0 %v1690_v28  ;;  %1946 = vlog2.f32 %v2346_v6  ;;  %v728_v55 = vsel %vm573_vm0, %v672_v16, 0.0  ;;  %v90_v15 = vld [vmem:[%s2336_s23 + $0xf8] sm:$0xff] }
  0x96   : > { %v725_v9 = vadd.f32 %v724_v19, %v723_v44  ;;  %v674_v10 = vmul.f32 %v2629_v8, %v2629_v8  ;;  %v730_v46 = vsel %vm573_vm0, %v673_v62, 0.0  ;;  %v187_v57 = vmax.f32 %v2634_v4, 0.0 }
  0x97   : > { %v2786_v56 = vadd.f32 %v809_v39, %v808_v54  ;;  %v675_v20 = vmul.f32 %v2715_v11, %v2715_v11  ;;  %v188_v6 = vmax.f32 %v2637_v53, 0.0  ;;  %v171_v8 = vmax.f32 %v2681_v47, 0.0 }
  0x98   : > { %v1933_v5 = vpop.eup %1932  ;;  %v727_v48 = vadd.f32 %v726_v24, %v725_v9  ;;  %v172_v52 = vmax.f32 %v2685_v41, 0.0  ;;  %v676_v47 = vmul.f32 %v2745_v43, %v2745_v43  ;;  %v732_v41 = vsel %vm573_vm0, %v674_v10, 0.0  ;;  %v73_v43 = vld [vmem:[%s2336_s23 + $0x70] sm:$0xff] }
  0x99   : > { %v1935_v61 = vpop.eup %1934  ;;  %v534_v3 = vmul.f32 0.6931472, %v1933_v5  ;;  %v677_v62 = vmul.f32 %v155_v59, %v155_v59  ;;  %v734_v54 = vsel %vm573_vm0, %v675_v20, 0.0  ;;  %v678_v24 = vmul.f32 %v156_v38, %v156_v38 }
  0x9a   : > { %v1937_v2 = vpop.eup %1936  ;;  %v536_v60 = vmul.f32 0.6931472, %v1935_v61  ;;  %v729_v25 = vadd.f32 %v728_v55, %v727_v48  ;;  %v74_v61 = vld [vmem:[%s2336_s23 + $0x78] sm:$0xff] }
  0x9b   : > { %v1939_v33 = vpop.eup %1938  ;;  %v597_v50 = vsel %vm573_vm0, %v534_v3, 0.0  ;;  %v410_v34 = vmul.f32 0.6931472, %v1937_v2 }
  0x9c   : > { %v1941_v35 = vpop.eup %1940  ;;  %v598_v4 = vadd.f32 %v597_v50, %v2756_v31  ;;  %v599_v11 = vsel %vm573_vm0, %v536_v60, 0.0  ;;  %v412_v7 = vmul.f32 0.6931472, %v1939_v33  ;;  %v89_v31 = vld [vmem:[%s2336_s23 + $0xf0] sm:$0xff]  ;;  %v731_v16 = vadd.f32 %v730_v46, %v729_v25 }
  0x9d   : > { %v1943_v53 = vpop.eup %1942  ;;  %v2804_v27 = vadd.f32 %v410_v34, %v187_v57  ;;  %v378_v17 = vmul.f32 0.6931472, %v1941_v35  ;;  %v736_v46 = vsel %vm573_vm0, %v676_v47, 0.0  ;;  %v768_v50 = vmul.f32 %v2354_v23, %v2354_v23 }
  0x9e   : > { %v2809_v12 = vadd.f32 %v599_v11, %v598_v4  ;;  %v2812_v37 = vadd.f32 %v412_v7, %v188_v6  ;;  %v380_v28 = vmul.f32 0.6931472, %v1943_v53  ;;  %v733_v5 = vadd.f32 %v732_v41, %v731_v16  ;;  %v1945_v55 = vpop.eup %1944 }
  0x9f   : > { %v475_v26 = vmul.f32 %v2804_v27, %v155_v59  ;;  %v427_v19 = vadd.f32 %v378_v17, %v171_v8  ;;  %v1947_v3 = vpop.eup %1946  ;;  %v738_v6 = vsel %vm573_vm0, %v677_v62, 0.0  ;;  %v769_v35 = vmul.f32 %v2357_v29, %v2357_v29 }
  0xa0   : > { %v476_v39 = vmul.f32 %v2812_v37, %v156_v38  ;;  %v428_v44 = vadd.f32 %v380_v28, %v172_v52  ;;  %v735_v20 = vadd.f32 %v734_v54, %v733_v5  ;;  %v815_v59 = vsel %vm573_vm0, %v768_v50, 0.0  ;;  %v3336_v5 = vld [vmem:[#allocation12_spill] sm:$0xff] }
  0xa1   : > { %v2819_v9 = vadd.f32 %v475_v26, %v89_v31  ;;  %v459_v10 = vmul.f32 %v427_v19, %v2693_v21  ;;  %1948 = vlog2.f32 %v427_v19  ;;  %v770_v7 = vmul.f32 %v2387_v18, %v2387_v18  ;;  %v3334_v26 = vld [vmem:[#allocation11_spill] sm:$0xff] }
  0xa2   : > { %v2824_v57 = vadd.f32 %v476_v39, %v90_v15  ;;  %v460_v2 = vmul.f32 %v428_v44, %v2697_v0  ;;  %1950 = vlog2.f32 %v428_v44  ;;  %v737_v21 = vadd.f32 %v736_v46, %v735_v20  ;;  %v3335_v44 = vld [vmem:[#allocation9_spill] sm:$0xff]  ;;  %v3338_v20 = vld [vmem:[#allocation15_spill] sm:$0xff] }
  0xa3   : > { %1952 = vlog2.f32 %v2369_v51  ;;  %v491_v60 = vadd.f32 %v459_v10, %v73_v43  ;;  %v740_v0 = vsel %vm573_vm0, %v678_v24, 0.0  ;;  %v771_v29 = vmul.f32 %v2395_v30, %v2395_v30 }
  0xa4   : > { %v1692_v48 = vpack.c.bf16 %v2824_v57, %v2819_v9  ;;  %v492_v33 = vadd.f32 %v460_v2, %v74_v61  ;;  %1954 = vlog2.f32 %v2376_v58  ;;  %v739_v51 = vadd.f32 %v738_v6, %v737_v21 }
  0xa5   : > { %v766_v34 = vmul.f32 %v491_v60, %v491_v60  ;;  %1956 = vlog2.f32 %v2411_v14  ;;  %v817_v53 = vsel %vm573_vm0, %v769_v35, 0.0  ;;  %v542_v38 = vmul.f32 0.6931472, %v1945_v55 }
  0xa6   : > { %1693 = vmatprep.subr.bf16.mxu0 %v1692_v48  ;;  %v767_v8 = vmul.f32 %v492_v33, %v492_v33  ;;  %v1694_v52 = vpack.c.bf16 %v492_v33, %v491_v60  ;;  %v2841_v58 = vadd.f32 %v740_v0, %v739_v51  ;;  %1958 = vlog2.f32 %v2420_v22 }
  0xa7   : > { %v811_v4 = vsel %vm573_vm0, %v766_v34, 0.0  ;;  %1960 = vlog2.f32 %v2477_v40  ;;  %v819_v18 = vsel %vm573_vm0, %v770_v7, 0.0  ;;  %v772_v22 = vmul.f32 %v2435_v36, %v2435_v36  ;;  %v3339_v34 = vld [vmem:[#allocation13_spill] sm:$0xff] }
  0xa8   : > { %v812_v11 = vadd.f32 %v811_v4, %v2786_v56  ;;  %v813_v23 = vsel %vm573_vm0, %v767_v8, 0.0  ;;  %1695 = vmatpush3.bf16.msra.mxu0 %v1694_v52  ;;  %1962 = vlog2.f32 %v2484_v63  ;;  %v544_v31 = vmul.f32 0.6931472, %v1947_v3  ;;  %v3337_v3 = vld [vmem:[#allocation10_spill] sm:$0xff]  ;;  %v3340_v8 = vld [vmem:[#allocation16_spill] sm:$0xff] }
  0xa9   : > { %v821_v28 = vsel %vm573_vm0, %v771_v29, 0.0  ;;  %v773_v15 = vmul.f32 %v2439_v49, %v2439_v49  ;;  %1964 = vlog2.f32 %v3334_v26  ;;  %v605_v36 = vsel %vm573_vm0, %v542_v38, 0.0 }
  0xaa   : > { %v814_v14 = vadd.f32 %v813_v23, %v812_v11  ;;  %v823_v43 = vsel %vm573_vm0, %v772_v22, 0.0  ;;  %v774_v24 = vmul.f32 %v3335_v44, %v3335_v44  ;;  %1966 = vlog2.f32 %v3336_v5 }
  0xab   : > { %v1949_v25 = vpop.eup %1948  ;;  %937 = vmatmul.mubr.f32.vlgmr.msra.gmra.mrb[0].mxu0 %v2711_v1  ;;  %v607_v49 = vsel %vm573_vm0, %v544_v31, 0.0  ;;  %v825_v46 = vsel %vm573_vm0, %v773_v15, 0.0  ;;  %v775_v2 = vmul.f32 %v3337_v3, %v3337_v3  ;;  %1968 = vlog2.f32 %v3338_v20 }
  0xac   : > { %v1951_v56 = vpop.eup %1950  ;;  %v538_v17 = vmul.f32 0.6931472, %v1949_v25  ;;  %v816_v47 = vadd.f32 %v815_v59, %v814_v14  ;;  %v827_v50 = vsel %vm573_vm0, %v774_v24, 0.0  ;;  %v776_v0 = vmul.f32 %v3339_v34, %v3339_v34  ;;  %v3341_v59 = vld [vmem:[#allocation14_spill] sm:$0xff] }
  0xad   : > { %v1953_v41 = vpop.eup %1952  ;;  %v540_v30 = vmul.f32 0.6931472, %v1951_v56  ;;  %1970 = vlog2.f32 %v3340_v8  ;;  %v829_v23 = vsel %vm573_vm0, %v775_v2, 0.0  ;;  %v777_v7 = vmul.f32 %v3341_v59, %v3341_v59 }
  0xae   : > { %v601_v40 = vsel %vm573_vm0, %v538_v17, 0.0  ;;  %v818_v16 = vadd.f32 %v817_v53, %v816_v47  ;;  %v1955_v1 = vpop.eup %1954  ;;  %v546_v63 = vmul.f32 0.6931472, %v1953_v41  ;;  %1972 = vlog2.f32 %v2718_v45  ;;  %v3342_v17 = vld [vmem:[#allocation17_spill] sm:$0xff] }
  0xaf   : > { %v602_v19 = vadd.f32 %v601_v40, %v2809_v12  ;;  %v603_v62 = vsel %vm573_vm0, %v540_v30, 0.0  ;;  %v1957_v39 = vpop.eup %1956  ;;  %v548_v61 = vmul.f32 0.6931472, %v1955_v1  ;;  %v831_v38 = vsel %vm573_vm0, %v776_v0, 0.0 }
  0xb0   : > { %v820_v54 = vadd.f32 %v819_v18, %v818_v16  ;;  %v1959_v12 = vpop.eup %1958  ;;  %v609_v6 = vsel %vm573_vm0, %v546_v63, 0.0  ;;  %v550_v48 = vmul.f32 0.6931472, %v1957_v39  ;;  %v778_v47 = vmul.f32 %v3342_v17, %v3342_v17 }
  0xb1   : > { %v604_v55 = vadd.f32 %v603_v62, %v602_v19  ;;  %v1961_v21 = vpop.eup %1960  ;;  %v611_v51 = vsel %vm573_vm0, %v548_v61, 0.0  ;;  %v552_v35 = vmul.f32 0.6931472, %v1959_v12  ;;  %1974 = vlog2.f32 %v2751_v42 }
  0xb2   : > { %v822_v10 = vadd.f32 %v821_v28, %v820_v54  ;;  %v1963_v11 = vpop.eup %1962  ;;  %v613_v14 = vsel %vm573_vm0, %v550_v48, 0.0  ;;  %v554_v25 = vmul.f32 0.6931472, %v1961_v21  ;;  %v833_v45 = vsel %vm573_vm0, %v777_v7, 0.0  ;;  %v3343_v28 = vld [vmem:[#allocation18_spill] sm:$0xff] }
  0xb3   : > { %v606_v60 = vadd.f32 %v605_v36, %v604_v55  ;;  %v1965_v56 = vpop.eup %1964  ;;  %v615_v18 = vsel %vm573_vm0, %v552_v35, 0.0  ;;  %v556_v22 = vmul.f32 0.6931472, %v1963_v11  ;;  %v779_v40 = vmul.f32 %v3343_v28, %v3343_v28 }
  0xb4   : > { %v824_v33 = vadd.f32 %v823_v43, %v822_v10  ;;  %v1967_v31 = vpop.eup %1966  ;;  %1976 = vlog2.f32 %v2804_v27  ;;  %v617_v1 = vsel %vm573_vm0, %v554_v25, 0.0  ;;  %v558_v15 = vmul.f32 0.6931472, %v1965_v56 }
  0xb5   : > { %v608_v52 = vadd.f32 %v607_v49, %v606_v60  ;;  %v1969_v19 = vpop.eup %1968  ;;  %v835_v42 = vsel %vm573_vm0, %v778_v47, 0.0  ;;  %v780_v62 = vmul.f32 %v2736_v32, %v2736_v32  ;;  %1978 = vlog2.f32 %v2812_v37 }
  0xb6   : > { %v826_v4 = vadd.f32 %v825_v46, %v824_v33  ;;  %v619_v63 = vsel %vm573_vm0, %v556_v22, 0.0  ;;  %v560_v54 = vmul.f32 0.6931472, %v1967_v31  ;;  %v781_v27 = vmul.f32 %v2763_v13, %v2763_v13 }
  0xb7   : > { %v610_v29 = vadd.f32 %v609_v6, %v608_v52  ;;  %v1971_v43 = vpop.eup %1970  ;;  %v837_v44 = vsel %vm573_vm0, %v779_v40, 0.0  ;;  %v562_v55 = vmul.f32 0.6931472, %v1969_v19  ;;  %v621_v49 = vsel %vm573_vm0, %v558_v15, 0.0 }
  0xb8   : > { %v828_v53 = vadd.f32 %v827_v50, %v826_v4  ;;  %v1973_v61 = vpop.eup %1972  ;;  %v782_v32 = vmul.f32 %v2819_v9, %v2819_v9  ;;  %v839_v37 = vsel %vm573_vm0, %v780_v62, 0.0  ;;  %v564_v46 = vmul.f32 0.6931472, %v1971_v43 }
  0xb9   : > { %v612_v41 = vadd.f32 %v611_v51, %v610_v29  ;;  %v623_v3 = vsel %vm573_vm0, %v560_v54, 0.0  ;;  %v783_v13 = vmul.f32 %v2824_v57, %v2824_v57  ;;  %v841_v20 = vsel %vm573_vm0, %v781_v27, 0.0 }
  0xba   : > { %v830_v30 = vadd.f32 %v829_v23, %v828_v53  ;;  %v566_v48 = vmul.f32 0.6931472, %v1973_v61  ;;  %v625_v33 = vsel %vm573_vm0, %v562_v55, 0.0  ;;  %v843_v9 = vsel %vm573_vm0, %v782_v32, 0.0 }
  0xbb   : > { %v614_v16 = vadd.f32 %v613_v14, %v612_v41  ;;  %v1975_v2 = vpop.eup %1974  ;;  %v627_v8 = vsel %vm573_vm0, %v564_v46, 0.0  ;;  %v845_v51 = vsel %vm573_vm0, %v783_v13, 0.0  ;;  %v3350_v46 = vld [vmem:[#allocation5_spill] sm:$0xff] }
  0xbc   : > { %v832_v26 = vadd.f32 %v831_v38, %v830_v30  ;;  %v568_v0 = vmul.f32 0.6931472, %v1975_v2  ;;  %v629_v11 = vsel %vm573_vm0, %v566_v48, 0.0  ;;  %v2116_v48 = vmov (%p49_p0), 0.0  }
  0xbd   : > { %v616_v36 = vadd.f32 %v615_v18, %v614_v16  ;;  %1650 = vmatprep.mubr.msk.f32.mxu0 (%p49_p0), %vm2115_vm1, %v2116_v48  ;;  %1661 = vmatprep.mubr.msk.f32.mxu1 (%p49_p0), %vm2115_vm1, %v2116_v48  ;;  %v3019_v48 = vld [vmem:[%s3301_s6 + $0x10] sm:$0xff] (%p49_p0) }
  0xbe   : > { %v834_v39 = vadd.f32 %v833_v45, %v832_v26  ;;  %v1977_v21 = vpop.eup %1976  ;;  %v631_v29 = vsel %vm573_vm0, %v568_v0, 0.0 }
  0xbf   : > { %v618_v24 = vadd.f32 %v617_v1, %v616_v36  ;;  %v1979_v52 = vpop.eup %1978  ;;  %v570_v4 = vmul.f32 0.6931472, %v1977_v21 }
  0xc0   : > { %v836_v5 = vadd.f32 %v835_v42, %v834_v39  ;;  %v572_v7 = vmul.f32 0.6931472, %v1979_v52  ;;  %v2975_v52 = vld [vmem:[%s3305_s10 + $0x1] sm:$0x1] (%p49_p0) }
  0xc1   : > { %v620_v10 = vadd.f32 %v619_v63, %v618_v24  ;;  %v633_v25 = vsel %vm573_vm0, %v570_v4, 0.0  ;;  %v3344_v24 = vld [vmem:[#allocation8_spill] sm:$0xff]  ;;  %v950_v4 = vand.u32 (%p49_p0), 2147483647, %v2975_v52 }
  0xc2   : > { %v838_v12 = vadd.f32 %v837_v44, %v836_v5  ;;  %v635_v56 = vsel %vm573_vm0, %v572_v7, 0.0  ;;  %v2986_v7 = vld [vmem:[%s3303_s8 + $0x8] sm:$0xff] (%p49_p0) }
  0xc3   : > { %v622_v60 = vadd.f32 %v621_v49, %v620_v10  ;;  %v3346_v49 = vld [vmem:[#allocation7_spill] sm:$0xff] }
  0xc4   : > { %v840_v6 = vadd.f32 %v839_v37, %v838_v12  ;;  %v3348_v37 = vld [vmem:[#allocation6_spill] sm:$0xff] }
  0xc5   : > { %v624_v50 = vadd.f32 %v623_v3, %v622_v60  ;;  %v2955_v60 = vld [vmem:[%s3300_s5 + $0x8] sm:$0xff] (%p49_p0) }
  0xc6   : > { %v842_v34 = vadd.f32 %v841_v20, %v840_v6  ;;  %v2114_v20 = vmov (%p49_p0), 0.0|0.0  }
  0xc7   : > { %v626_v35 = vadd.f32 %v625_v33, %v624_v50  ;;  %1696 = vmatprep.subr.bf16.mxu0 (%p49_p0), %v2114_v20  ;;  %v1024_v33 = vand.u32 (%p49_p0), 2147483647, %v2955_v60  ;;  %1702 = vmatprep.subr.bf16.mxu1 (%p49_p0), %v2114_v20 }
  0xc8   : > { %v844_v57 = vadd.f32 %v843_v9, %v842_v34  ;;  %v2968_v9 = vld [vmem:[%s3300_s5 + $0x18] sm:$0xff] (%p49_p0) }
  0xc9   : > { %v628_v23 = vadd.f32 %v627_v8, %v626_v35  ;;  %v1028_v50 = vsub.f32 (%p49_p0), 0.0, %v1024_v33 }
  0xca   : > { %v846_v59 = vadd.f32 %v845_v51, %v844_v57 }
  0xcb   : > { %v630_v14 = vadd.f32 %v629_v11, %v628_v23  ;;  %v1033_v51 = vmul.f32 (%p49_p0), 1.442695, %v1028_v50  ;;  %v3027_v50 = vld [vmem:[%s3301_s6 + $0x18] sm:$0xff] (%p49_p0) }
  0xcc   : > { %847 = vadd.xlane.f32.xlu1 %v846_v59  ;;  %v2981_v59 = vld [vmem:[%s3303_s8] sm:$0xff] (%p49_p0) }
  0xcd   : > { %v632_v53 = vadd.f32 %v631_v29, %v630_v14  ;;  %v951_v29 = vsub.f32 (%p49_p0), 0.0, %v950_v4  ;;  %v1282_v14 = vand.u32 (%p49_p0), 2147483647, %v2981_v59  ;;  %v1010_v4 = vld [vmem:[%s3299_s4 + $0x18] sm:$0xff] (%p49_p0) }
  0xcf   : > { %v634_v38 = vadd.f32 %v633_v25, %v632_v53  ;;  %v1283_v25 = vand.u32 (%p49_p0), 2147483647, %v2986_v7  ;;  %v952_v53 = vmul.f32 (%p49_p0), 1.442695, %v951_v29  ;;  %v1278_v29 = vmax.f32 (%p49_p0), %v2981_v59, 0.0 }
  0xd1   : > { %v636_v17 = vadd.f32 %v635_v56, %v634_v38  ;;  %v1286_v56 = vsub.f32 (%p49_p0), 0.0, %v1282_v14  ;;  %v1287_v38 = vsub.f32 (%p49_p0), 0.0, %v1283_v25 }
  0xd3   : > { %637 = vadd.xlane.f32.xlu0 %v636_v17  ;;  %v1290_v17 = vmul.f32 (%p49_p0), 1.442695, %v1286_v56  ;;  %v1279_v56 = vmax.f32 (%p49_p0), %v2986_v7, 0.0  ;;  %v3072_v7 = vld [vmem:[%s3304_s9] sm:$0xff] (%p49_p0) }
  0xd7   : > { %742 = vadd.xlane.f32.xlu0 %v2841_v58 }
 0x159   : > { %v848_v47 = vpop.xlane.xlu1 %847 }
 0x15a   : > { %v849_v41 = vrot.slane %v848_v47, 4 }
 0x15c   : > { %v850_v18 = vadd.f32 %v849_v41, %v848_v47  ;;  %v1292_v47 = vmul.f32 (%p49_p0), 1.442695, %v1287_v38 }
 0x15e   : > { %v851_v45 = vrot.slane %v850_v18, 2 }
 0x160   : > { %v638_v22 = vpop.xlane.xlu0 %637  ;;  %v852_v26 = vadd.f32 %v851_v45, %v850_v18 }
 0x161   : > { %v639_v30 = vrot.slane %v638_v22, 4 }
 0x162   : > { %v853_v63 = vrot.slane %v852_v26, 1 }
 0x163   : > { %v640_v31 = vadd.f32 %v639_v30, %v638_v22 }
 0x164   : > { %v743_v28 = vpop.xlane.xlu0 %742  ;;  %v854_v39 = vadd.f32 %v853_v63, %v852_v26  ;;  %v1020_v63 = vmax.f32 (%p49_p0), %v2955_v60, 0.0  ;;  %v1008_v60 = vld [vmem:[%s3299_s4 + $0x8] sm:$0xff] (%p49_p0) }
 0x165   : > { %v641_v40 = vrot.slane %v640_v31, 2  ;;  %v744_v16 = vrot.slane %v743_v28, 4 }
 0x167   : > { %v745_v1 = vadd.f32 %v744_v16, %v743_v28  ;;  %v642_v15 = vadd.f32 %v641_v40, %v640_v31 }
 0x169   : > { %v746_v19 = vrot.slane %v745_v1, 2  ;;  %v643_v42 = vrot.slane %v642_v15, 1 }
 0x16b   : > { %v747_v62 = vadd.f32 %v746_v19, %v745_v1  ;;  %v644_v36 = vadd.f32 %v643_v42, %v642_v15 }
 0x16d   : > { %1708 = vpush %v644_v36  ;;  %v748_v58 = vrot.slane %v747_v62, 1 }
 0x16f   : > { %v749_v54 = vadd.f32 %v748_v58, %v747_v62 }
 0x171   : > { %1710 = vpush %v749_v54 }
 0x172   : > { %1712 = vpush %v854_v39  ;;  %v2995_v39 = vld [vmem:[%s3301_s6] sm:$0xff] (%p49_p0) }
 0x17e   : > { %v1629_v43 = vpop.f32.mrb[0].mxu0 }
 0x17f   : > { %v1630_v27 = vpop.f32.mrb[1].mxu0 }
 0x180   : > { %v1631_v44 = vadd.f32 %v1630_v27, %v1629_v43 }
 0x182   : > { %v2920_v3 = vadd.f32 %v3344_v24, %v1631_v44   ;;  %v3001_v24 = vld [vmem:[%s3301_s6 + $0x8] sm:$0xff] (%p49_p0) }
 0x184   : > { %v3345_v5 = vmov %v2920_v3 }
 0x185   : > { %v3355_v3 = vmov %v3345_v5 }
 0x186   :  { %v2949_v3 = vld [vmem:[%s3300_s5] sm:$0xff] (%p49_p0) }
 0x187   :  { %v1023_v6 = vand.u32 (%p49_p0), 2147483647, %v2949_v3  ;;  %v1019_v62 = vmax.f32 (%p49_p0), %v2949_v3, 0.0 }
 0x189   :  { %v1027_v21 = vsub.f32 (%p49_p0), 0.0, %v1023_v6 }
 0x18b   :  { %v1031_v8 = vmul.f32 (%p49_p0), 1.442695, %v1027_v21 }
 0x18d   :  { %1980 = vpow2.f32 (%p49_p0), %v1031_v8  ;;  %v1009_v8 = vld [vmem:[%s3299_s4 + $0x10] sm:$0xff] (%p49_p0) }
 0x18e   :  { %1982 = vpow2.f32 (%p49_p0), %v1033_v51 }
 0x197   :  { %v1981_v41 = vpop.eup (%p49_p0), %1980 }
 0x198   :  { %v1983_v18 = vpop.eup (%p49_p0), %1982  ;;  %v1039_v22 = vadd.f32 (%p49_p0), 1.0, %v1981_v41  ;;  %v946_v41 = vld [vmem:[%s3305_s10] sm:$0x1] (%p49_p0) }
 0x199   :  { %v1040_v30 = vadd.f32 (%p49_p0), 1.0, %v1983_v18 }
 0x19e   : > { %s1709_s28 = spop %1708 }
 0x19f   : > { %v646_v55 = vstv %s1709_s28 }
 0x1a0   : > { %v2923_v2 = vadd.f32 %v3346_v49, %v646_v55   ;;  %v1022_v49 = vmax.f32 (%p49_p0), %v2968_v9, 0.0 }
 0x1a2   : > { %v3347_v61 = vmov %v2923_v2  ;;  %s1711_s30 = spop %1710  ;;  %51 = sbr.rel (!%p49_p0) target bundleno = 2 (0x2), region = 91 }
 0x1a3   : > { %v751_v32 = vstv %s1711_s30  ;;  %s1713_s15 = spop %1712  ;;  %v3354_v2 = vmov %v3347_v61 }
 0x1a4   : > { %v2926_v1 = vadd.f32 %v3348_v37, %v751_v32   ;;  %v856_v12 = vstv %s1713_s15  ;;  %v2962_v2 = vld [vmem:[%s3300_s5 + $0x10] sm:$0xff] (%p49_p0)  ;;  %v1001_v32 = vlaneseq (%p49_p0) }
 0x1a5   : > { %v2929_v0 = vadd.f32 %v3350_v46, %v856_v12   ;;  %v1025_v34 = vand.u32 (%p49_p0), 2147483647, %v2962_v2  ;;  %v1021_v27 = vmax.f32 (%p49_p0), %v2962_v2, 0.0  ;;  %v1007_v12 = vld [vmem:[%s3299_s4] sm:$0xff] (%p49_p0)  ;;  %v949_v2 = vmax.f32 (%p49_p0), %v2975_v52, 0.0 }
 0x1a6   : > { %v3349_v10 = vmov %v2926_v1 }
 0x1a7   : > { %v3351_v13 = vmov %v2929_v0  ;;  %v3353_v1 = vmov %v3349_v10  ;;  %v1029_v35 = vsub.f32 (%p49_p0), 0.0, %v1025_v34 }
 0x1a8   : > { %v3352_v0 = vmov %v3351_v13 }
 0x1a9   :  { %v1026_v0 = vand.u32 2147483647, %v2968_v9  ;;  %v1035_v11 = vmul.f32 1.442695, %v1029_v35  ;;  %v1002_v35 = vshrl.u32 %v1001_v32, 7 }
 0x1ab   :  { %v1030_v57 = vsub.f32 0.0, %v1026_v0  ;;  %1984 = vpow2.f32 %v1035_v11 }
 0x1ad   :  { %v1037_v23 = vmul.f32 1.442695, %v1030_v57 }
 0x1af   :  { %1986 = vpow2.f32 %v1037_v23  ;;  %v3048_v23 = vld [vmem:[%s3305_s10 + $0x2] sm:$0x1] }
 0x1b0   :  { %1988 = vpow2.f32 %v952_v53 }
 0x1b1   :  { %1990 = vpow2.f32 %v1290_v17 }
 0x1b2   :  { %1992 = vpow2.f32 %v1292_v47 }
 0x1b3   :  { %1994 = vlog2.f32 %v1039_v22 }
 0x1b4   :  { %1996 = vlog2.f32 %v1040_v30  ;;  %v3067_v30 = vsub.s32 0, %v1002_v35 }
 0x1b5   :  { %v1985_v31 = vpop.eup %1984 }
 0x1b6   :  { %v1041_v28 = vadd.f32 1.0, %v1985_v31 }
 0x1b8   :  { %1998 = vlog2.f32 %v1041_v28 }
 0x1b9   :  { %v1987_v45 = vpop.eup %1986 }
 0x1ba   :  { %v1042_v40 = vadd.f32 1.0, %v1987_v45  ;;  %v1989_v16 = vpop.eup %1988  ;;  %v3077_v45 = vld [vmem:[%s3304_s9 + $0x8] sm:$0xff] }
 0x1bb   :  { %v954_v1 = vadd.f32 1.0, %v1989_v16  ;;  %v1991_v15 = vpop.eup %1990 }
 0x1bc   :  { %2000 = vlog2.f32 %v1042_v40  ;;  %v1993_v26 = vpop.eup %1992  ;;  %v1298_v19 = vadd.f32 1.0, %v1991_v15 }
 0x1bd   :  { %2002 = vlog2.f32 %v954_v1  ;;  %v1299_v42 = vadd.f32 1.0, %v1993_v26  ;;  %v1995_v36 = vpop.eup %1994  ;;  %v1266_v1 = vld [vmem:[%s3302_s7] sm:$0xff]  ;;  %v1267_v26 = vld [vmem:[%s3302_s7 + $0x8] sm:$0xff] }
 0x1be   :  { %2004 = vlog2.f32 %v1298_v19  ;;  %v1997_v58 = vpop.eup %1996  ;;  %v1044_v54 = vmul.f32 0.6931472, %v1995_v36 }
 0x1bf   :  { %2006 = vlog2.f32 %v1299_v42  ;;  %v1046_v43 = vmul.f32 0.6931472, %v1997_v58 }
 0x1c0   :  { %v3003_v55 = vadd.f32 %v1044_v54, %v1019_v62 }
 0x1c1   :  { %v3009_v46 = vadd.f32 %v1046_v43, %v1020_v63 }
 0x1c2   :  { %v1999_v44 = vpop.eup %1998  ;;  %v1055_v6 = vmul.f32 %v3003_v55, %v2995_v39 }
 0x1c3   :  { %v1048_v3 = vmul.f32 0.6931472, %v1999_v44  ;;  %v1056_v9 = vmul.f32 %v3009_v46, %v3001_v24  ;;  %v1273_v44 = vld [vmem:[%s3303_s8 + $0x18] sm:$0xff] }
 0x1c4   :  { %v3031_v0 = vadd.f32 %v1055_v6, %v1007_v12 }
 0x1c5   :  { %v3029_v34 = vadd.f32 %v1048_v3, %v1021_v27  ;;  %v3038_v57 = vadd.f32 %v1056_v9, %v1008_v60  ;;  %v1272_v27 = vld [vmem:[%s3303_s8 + $0x10] sm:$0xff] }
 0x1c6   :  { %v2001_v37 = vpop.eup %2000  ;;  %v1280_v9 = vmax.f32 %v1272_v27, 0.0 }
 0x1c7   :  { %v1050_v33 = vmul.f32 0.6931472, %v2001_v37  ;;  %v2003_v21 = vpop.eup %2002  ;;  %v1057_v11 = vmul.f32 %v3029_v34, %v3019_v48  ;;  %v1697_v17 = vpack.c.bf16 %v3038_v57, %v3031_v0 }
 0x1c8   :  { %v956_v52 = vmul.f32 0.6931472, %v2003_v21  ;;  %v2005_v14 = vpop.eup %2004 }
 0x1c9   :  { %v3036_v51 = vadd.f32 %v1050_v33, %v1022_v49  ;;  %v2007_v38 = vpop.eup %2006  ;;  %v3058_v47 = vadd.f32 %v1057_v11, %v1009_v8  ;;  %v1303_v18 = vmul.f32 0.6931472, %v2005_v14  ;;  %1698 = vmatpush3.bf16.msra.mxu0 %v1697_v17  ;;  %v1285_v49 = vand.u32 2147483647, %v1273_v44  ;;  %v3120_v11 = vld [vmem:[%s3304_s9 + $0x10] sm:$0xff] }
 0x1ca   :  { %v3053_v53 = vadd.f32 %v956_v52, %v949_v2  ;;  %v1305_v31 = vmul.f32 0.6931472, %v2007_v38  ;;  %1699 = vmatprep.subr.bf16.mxu0 %v2114_v20  ;;  %v1281_v8 = vmax.f32 %v1273_v44, 0.0  ;;  %v1269_v38 = vld [vmem:[%s3302_s7 + $0x18] sm:$0xff] }
 0x1cb   :  { %v1058_v25 = vmul.f32 %v3036_v51, %v3027_v50  ;;  %v3079_v28 = vadd.f32 %v1303_v18, %v1278_v29  ;;  %v1289_v37 = vsub.f32 0.0, %v1285_v49  ;;  %v3125_v29 = vld [vmem:[%s3304_s9 + $0x18] sm:$0xff] }
 0x1cc   :  { %v958_v22 = vmul.f32 %v3053_v53, %v3048_v23  ;;  %v3089_v15 = vadd.f32 %v1305_v31, %v1279_v56  ;;  %v1268_v56 = vld [vmem:[%s3302_s7 + $0x10] sm:$0xff]  ;;  %v1135_v31 = vld [vmem:[%s3306_s11 + $0x1] sm:$0x1]  ;;  %s2117_s7 = smov [#allocation2]  }
 0x1cd   :  { %v3063_v59 = vadd.f32 %v1058_v25, %v1010_v4  ;;  %v1314_v19 = vmul.f32 %v3079_v28, %v3072_v7  ;;  %v1296_v3 = vmul.f32 1.442695, %v1289_v37  ;;  %s1553_s6 = sshll.u32 %s2117_s7, 4  ;;  %s1554_s6 = int_to_ptr.vmem [resolvable:$true] %s1553_s6 }
 0x1ce   :  { %v3084_v16 = vadd.f32 %v958_v22, %v946_v41  ;;  %v1315_v62 = vmul.f32 %v3089_v15, %v3077_v45  ;;  %s2050_s20 = scalar_lea.vmem %s1554_s6, 32  ;;  %p2055_p2 = scmp.lt.s32.totalorder %s1554_s6, %s1554_s6 }
 0x1cf   :  { %v1700_v40 = vpack.c.bf16 %v3063_v59, %v3058_v47  ;;  %v3100_v36 = vadd.f32 %v1314_v19, %v1266_v1  ;;  %p2051_p1 = scmp.ne.s32.totalorder %s1554_s6, %s2050_s20  ;;  %p2056_p3 = scmp.lt.s32.totalorder %s2050_s20, %s2050_s20 }
 0x1d0   :  { %v1004_v42 = vrot.slane %v3084_v16, %v3067_v30  ;;  %v3103_v58 = vadd.f32 %v1315_v62, %v1267_v26 }
 0x1d1   :  { %1701 = vmatpush3.bf16.msra.mxu0 %v1700_v40  ;;  %v1138_v40 = vand.u32 2147483647, %v1135_v31  ;;  %p2057_p4 = por %p2056_p3, %p2055_p2 }
 0x1d2   :  { %v1005_v63 = vadd.f32 %v1004_v42, %v3345_v5  ;;  %v1703_v43 = vpack.c.bf16 %v3103_v58, %v3100_v36  ;;  %v1284_v5 = vand.u32 2147483647, %v1272_v27  ;;  %v3151_v27 = vld [vmem:[%s3306_s11 + $0x2] sm:$0x1] }
 0x1d3   :  { %v1139_v1 = vsub.f32 0.0, %v1138_v40  ;;  %p2058_p5 = pnand %p2057_p4, %p2051_p1 }
 0x1d4   :  { %v1006_v54 = vmax.f32 %v1005_v63, 0.0  ;;  %1704 = vmatpush3.bf16.msra.mxu1 %v1703_v43  ;;  %v1288_v32 = vsub.f32 0.0, %v1284_v5  ;;  %v1137_v63 = vmax.f32 %v1135_v31, 0.0  ;;  %v1134_v5 = vld [vmem:[%s3306_s11] sm:$0x1] }
 0x1d5   :  { %1705 = vmatprep.subr.bf16.mxu1 %v2114_v20  ;;  %v1140_v26 = vmul.f32 1.442695, %v1139_v1  ;;  %v1089_v1 = vmul.f32 %v2995_v39, %v2995_v39 }
 0x1d6   :  { %1651 = vmatmul.mubr.msk.f32.vlgmr.msra.gmra.mrb[0].mxu0 %vm573_vm0, %v1006_v54  ;;  %v1294_v12 = vmul.f32 1.442695, %v1288_v32 }
 0x1d8   :  { %2008 = vpow2.f32 %v1294_v12 }
 0x1d9   :  { %2010 = vpow2.f32 %v1296_v3 }
 0x1e2   :  { %v2009_v60 = vpop.eup %2008 }
 0x1e3   :  { %v2011_v6 = vpop.eup %2010  ;;  %v1300_v33 = vadd.f32 1.0, %v2009_v60 }
 0x1e4   :  { %v1301_v20 = vadd.f32 1.0, %v2011_v6  ;;  %v3165_v6 = vld [vmem:[%s3307_s12 + $0x1] sm:$0x1] }
 0x1e5   :  { %2012 = vlog2.f32 %v1300_v33  ;;  %v1397_v33 = vand.u32 2147483647, %v3165_v6 }
 0x1e6   :  { %2014 = vlog2.f32 %v1301_v20 }
 0x1e7   :  { %2016 = vpow2.f32 %v1140_v26  ;;  %v1398_v20 = vsub.f32 0.0, %v1397_v33  ;;  %v1090_v26 = vmul.f32 %v3001_v24, %v3001_v24 }
 0x1ef   :  { %v2013_v2 = vpop.eup %2012 }
 0x1f0   :  { %v2015_v21 = vpop.eup %2014  ;;  %v1307_v52 = vmul.f32 0.6931472, %v2013_v2  ;;  %v1399_v2 = vmul.f32 1.442695, %v1398_v20 }
 0x1f1   :  { %v1309_v35 = vmul.f32 0.6931472, %v2015_v21  ;;  %v2017_v19 = vpop.eup %2016 }
 0x1f2   :  { %v3115_v4 = vadd.f32 %v1307_v52, %v1280_v9  ;;  %v1142_v42 = vadd.f32 1.0, %v2017_v19  ;;  %v974_v9 = vmul.f32 %v3048_v23, %v3048_v23  ;;  %v1110_v52 = vmul.f32 %v3031_v0, %v3031_v0 }
 0x1f3   :  { %v3127_v14 = vadd.f32 %v1309_v35, %v1281_v8  ;;  %v1111_v35 = vmul.f32 %v3038_v57, %v3038_v57  ;;  %v1091_v19 = vmul.f32 %v3019_v48, %v3019_v48  ;;  %v1370_v48 = vmul.f32 %v3103_v58, %v3103_v58 }
 0x1f4   :  { %v1316_v25 = vmul.f32 %v3115_v4, %v3120_v11  ;;  %2018 = vlog2.f32 %v1142_v42  ;;  %v1092_v42 = vmul.f32 %v3027_v50, %v3027_v50  ;;  %v1349_v58 = vmul.f32 %v3077_v45, %v3077_v45 }
 0x1f5   :  { %v1317_v17 = vmul.f32 %v3127_v14, %v3125_v29  ;;  %2020 = vlog2.f32 %v3003_v55  ;;  %v975_v55 = vsel %vm962_vm2, %v974_v9, 0.0  ;;  %v1115_v23 = vsel %vm573_vm0, %v1111_v35, 0.0 }
 0x1f6   :  { %v3139_v41 = vadd.f32 %v1316_v25, %v1268_v56  ;;  %2022 = vlog2.f32 %v3009_v46  ;;  %976 = vadd.xlane.f32.xlu1 %v975_v55  ;;  %v1374_v20 = vsel %vm1330_vm3, %v1370_v48, 0.0  ;;  %v1350_v45 = vmul.f32 %v3120_v11, %v3120_v11 }
 0x1f7   :  { %v3141_v18 = vadd.f32 %v1317_v17, %v1269_v38  ;;  %2024 = vpow2.f32 %v1399_v2  ;;  %v1114_v38 = vsel %vm573_vm0, %v1110_v52, 0.0  ;;  %v1396_v2 = vmax.f32 %v3165_v6, 0.0 }
 0x1f8   :  { %2026 = vlog2.f32 %v3079_v28  ;;  %v986_v28 = vmul.f32 %v3084_v16, %v3084_v16  ;;  %v3187_v31 = vadd.f32 %v1115_v23, %v1114_v38  ;;  %v1371_v33 = vmul.f32 %v3139_v41, %v3139_v41 }
 0x1f9   :  { %v1706_v22 = vpack.c.bf16 %v3141_v18, %v3139_v41  ;;  %2028 = vlog2.f32 %v3089_v15  ;;  %v1351_v23 = vmul.f32 %v3125_v29, %v3125_v29 }
 0x1fa   :  { %v987_v15 = vsel %vm962_vm2, %v986_v28, 0.0 }
 0x1fb   :  { %1707 = vmatpush3.bf16.msra.mxu1 %v1706_v22  ;;  %988 = vadd.xlane.f32.xlu1 %v987_v15  ;;  %v1395_v15 = vld [vmem:[%s3307_s12 + $0x2] sm:$0x1] }
 0x1fe   :  { %v2019_v62 = vpop.eup %2018 }
 0x1ff   :  { %v1144_v54 = vmul.f32 0.6931472, %v2019_v62  ;;  %v2021_v21 = vpop.eup %2020  ;;  %v1093_v62 = vsel %vm573_vm0, %v1089_v1, 0.0 }
 0x200   :  { %v2023_v8 = vpop.eup %2022  ;;  %v1064_v46 = vmul.f32 0.6931472, %v2021_v21 }
 0x201   :  { %v1145_v43 = vadd.f32 %v1144_v54, %v1137_v63  ;;  %v2025_v25 = vpop.eup %2024  ;;  %v1066_v56 = vmul.f32 0.6931472, %v2023_v8  ;;  %v1094_v63 = vsel %vm573_vm0, %v1090_v26, 0.0  ;;  %v1096_v54 = vsel %vm573_vm0, %v1091_v19, 0.0 }
 0x202   :  { %v1401_v17 = vadd.f32 1.0, %v2025_v25  ;;  %v1072_v0 = vsel %vm573_vm0, %v1064_v46, 0.0  ;;  %v2027_v40 = vpop.eup %2026  ;;  %v1095_v39 = vadd.f32 %v1094_v63, %v1093_v62  ;;  %v1357_v19 = vsel %vm1330_vm3, %v1351_v23, 0.0  ;;  %v1393_v62 = vld [vmem:[%s3307_s12] sm:$0x1] }
 0x203   :  { %v1146_v44 = vmul.f32 %v1145_v43, %v3151_v27  ;;  %v1073_v22 = vsel %vm573_vm0, %v1066_v56, 0.0  ;;  %v2029_v16 = vpop.eup %2028  ;;  %v1323_v24 = vmul.f32 0.6931472, %v2027_v40 }
 0x204   :  { %v3183_v57 = vadd.f32 %v1073_v22, %v1072_v0  ;;  %2030 = vlog2.f32 %v1401_v17  ;;  %v1097_v50 = vadd.f32 %v1096_v54, %v1095_v39  ;;  %v1355_v17 = vsel %vm1330_vm3, %v1350_v45, 0.0 }
 0x205   :  { %v3157_v49 = vadd.f32 %v1146_v44, %v1134_v5  ;;  %v1369_v44 = vmul.f32 %v3100_v36, %v3100_v36  ;;  %v1098_v5 = vsel %vm573_vm0, %v1092_v42, 0.0  ;;  %2032 = vlog2.f32 %v1145_v43 }
 0x206   :  { %2034 = vlog2.f32 %v3115_v4  ;;  %v1348_v43 = vmul.f32 %v3072_v7, %v3072_v7  ;;  %v1372_v4 = vmul.f32 %v3141_v18, %v3141_v18  ;;  %v1376_v7 = vsel %vm1330_vm3, %v1371_v33, 0.0 }
 0x207   :  { %v1191_v32 = vrot.slane %v3157_v49, %v3067_v30  ;;  %2036 = vlog2.f32 %v3127_v14  ;;  %v1373_v14 = vsel %vm1330_vm3, %v1369_v44, 0.0  ;;  %v1353_v18 = vsel %vm1330_vm3, %v1349_v58, 0.0 }
 0x208   :  { %v1375_v9 = vadd.f32 %v1374_v20, %v1373_v14  ;;  %v1378_v8 = vsel %vm1330_vm3, %v1372_v4, 0.0  ;;  %v1352_v52 = vsel %vm1330_vm3, %v1348_v43, 0.0  ;;  %v1173_v38 = vmul.f32 %v3157_v49, %v3157_v49 }
 0x209   :  { %v1354_v46 = vadd.f32 %v1353_v18, %v1352_v52  ;;  %v1112_v43 = vmul.f32 %v3058_v47, %v3058_v47  ;;  %v1113_v20 = vmul.f32 %v3063_v59, %v3063_v59 }
 0x20a   :  { %v1377_v41 = vadd.f32 %v1376_v7, %v1375_v9  ;;  %v1174_v29 = vsel %vm962_vm2, %v1173_v38, 0.0 }
 0x20b   :  { %v1356_v1 = vadd.f32 %v1355_v17, %v1354_v46  ;;  %v1117_v47 = vsel %vm573_vm0, %v1112_v43, 0.0  ;;  %v1119_v9 = vsel %vm573_vm0, %v1113_v20, 0.0 }
 0x20c   :  { %v3227_v55 = vadd.f32 %v1378_v8, %v1377_v41  ;;  %v1421_v41 = vmul.f32 %v1395_v15, %v1395_v15 }
 0x20d   :  { %v1358_v63 = vadd.f32 %v1357_v19, %v1356_v1 }
 0x20e   :  { %v1422_v59 = vsel %vm1409_vm4, %v1421_v41, 0.0 }
 0x283   :  { %v977_v45 = vpop.xlane.xlu1 %976 }
 0x2a9   :  { %v1261_v37 = vpop.f32.mrb[0].mxu0 }
 0x2aa   :  { %v1262_v12 = vadd.f32 %v1261_v37, %v1191_v32  ;;  %v1652_v3 = vpop.f32.mrb[1].mxu0  ;;  %v1325_v32 = vmul.f32 0.6931472, %v2029_v16  ;;  %v1331_v37 = vsel %vm1330_vm3, %v1323_v24, 0.0 }
 0x2ab   :  { %v1099_v3 = vadd.f32 %v1098_v5, %v1097_v50 }
 0x2ac   :  { %v1265_v60 = vmax.f32 %v1262_v12, 0.0  ;;  %v2031_v12 = vpop.eup %2030  ;;  %v1332_v36 = vsel %vm1330_vm3, %v1325_v32, 0.0 }
 0x2ad   :  { %1100 = vadd.xlane.f32.xlu1 %v1099_v3  ;;  %v1403_v21 = vmul.f32 0.6931472, %v2031_v12  ;;  %v2033_v35 = vpop.eup %2032 }
 0x2ae   :  { %1662 = vmatmul.mubr.msk.f32.vlgmr.msra.gmra.mrb[0].mxu1 %vm573_vm0, %v1265_v60  ;;  %v1333_v60 = vadd.f32 %v1332_v36, %v1331_v37  ;;  %v2035_v6 = vpop.eup %2034  ;;  %v1149_v56 = vmul.f32 0.6931472, %v2033_v35  ;;  %v978_v35 = vrot.slane %v977_v45, 4 }
 0x2af   :  { %v1404_v25 = vadd.f32 %v1403_v21, %v1396_v2  ;;  %v2037_v11 = vpop.eup %2036  ;;  %v1327_v0 = vmul.f32 0.6931472, %v2035_v6  ;;  %v1118_v21 = vadd.f32 %v1117_v47, %v3187_v31  ;;  %v989_v31 = vpop.xlane.xlu1 %988 }
 0x2b0   :  { %v1150_v22 = vsel %vm962_vm2, %v1149_v56, 0.0  ;;  %v1329_v28 = vmul.f32 0.6931472, %v2037_v11 }
 0x2b1   :  { %2038 = vlog2.f32 %v1404_v25  ;;  %1151 = vadd.xlane.f32.xlu1 %v1150_v22  ;;  %v1334_v40 = vsel %vm1330_vm3, %v1327_v0, 0.0  ;;  %v1405_v42 = vmul.f32 %v1404_v25, %v1395_v15  ;;  %v1120_v7 = vadd.f32 %v1119_v9, %v1118_v21 }
 0x2b2   :  { %v1335_v49 = vadd.f32 %v1334_v40, %v1333_v60  ;;  %v1336_v26 = vsel %vm1330_vm3, %v1329_v28, 0.0  ;;  %2040 = vlog2.f32 %v3029_v34  ;;  %v990_v25 = vrot.slane %v989_v31, 4 }
 0x2b3   :  { %v1406_v54 = vadd.f32 %v1405_v42, %v1393_v62  ;;  %2042 = vlog2.f32 %v3053_v53 }
 0x2b4   :  { %v1337_v16 = vadd.f32 %v1336_v26, %v1335_v49  ;;  %2044 = vlog2.f32 %v3036_v51  ;;  %v991_v56 = vadd.f32 %v990_v25, %v989_v31 }
 0x2b5   :  { %1175 = vadd.xlane.f32.xlu1 %v1174_v29  ;;  %v1433_v5 = vmul.f32 %v1406_v54, %v1406_v54  ;;  %v1451_v37 = vrot.slane %v1406_v54, %v3067_v30 }
 0x2b7   :  { %v1434_v32 = vsel %vm1409_vm4, %v1433_v5, 0.0 }
 0x2b9   :  { %1359 = vadd.xlane.f32.xlu1 %v1358_v63 }
 0x2bb   :  { %v2039_v44 = vpop.eup %2038 }
 0x2bc   :  { %v1408_v39 = vmul.f32 0.6931472, %v2039_v44  ;;  %v2041_v48 = vpop.eup %2040 }
 0x2bd   :  { %v2043_v50 = vpop.eup %2042  ;;  %v1068_v12 = vmul.f32 0.6931472, %v2041_v48 }
 0x2be   :  { %v1410_v24 = vsel %vm1409_vm4, %v1408_v39, 0.0  ;;  %v2045_v3 = vpop.eup %2044  ;;  %v961_v58 = vmul.f32 0.6931472, %v2043_v50 }
 0x2bf   :  { %1411 = vadd.xlane.f32.xlu1 %v1410_v24  ;;  %v1070_v4 = vmul.f32 0.6931472, %v2045_v3  ;;  %v1075_v34 = vsel %vm573_vm0, %v1068_v12, 0.0 }
 0x2c0   :  { %v1076_v51 = vadd.f32 %v1075_v34, %v3183_v57  ;;  %v963_v30 = vsel %vm962_vm2, %v961_v58, 0.0  ;;  %v1161_v57 = vmul.f32 %v3151_v27, %v3151_v27  ;;  %v979_v27 = vadd.f32 %v978_v35, %v977_v45 }
 0x2c1   :  { %v1077_v14 = vsel %vm573_vm0, %v1070_v4, 0.0 }
 0x2c2   :  { %v1078_v2 = vadd.f32 %v1077_v14, %v1076_v51  ;;  %v1162_v8 = vsel %vm962_vm2, %v1161_v57, 0.0  ;;  %v980_v0 = vrot.slane %v979_v27, 2 }
 0x2c3   :  { %1435 = vadd.xlane.f32.xlu1 %v1434_v32 }
 0x2c4   :  { %v981_v29 = vadd.f32 %v980_v0, %v979_v27 }
 0x2c6   :  { %v982_v32 = vrot.slane %v981_v29, 1 }
 0x33a   :  { %v1101_v52 = vpop.xlane.xlu1 %1100 }
 0x33b   :  { %v1102_v46 = vrot.slane %v1101_v52, 4 }
 0x33d   :  { %v1103_v23 = vadd.f32 %v1102_v46, %v1101_v52 }
 0x33e   :  { %v1152_v18 = vpop.xlane.xlu1 %1151 }
 0x33f   :  { %v1153_v11 = vrot.slane %v1152_v18, 4  ;;  %v1104_v40 = vrot.slane %v1103_v23, 2 }
 0x341   :  { %v1154_v49 = vadd.f32 %v1153_v11, %v1152_v18  ;;  %v1105_v62 = vadd.f32 %v1104_v40, %v1103_v23 }
 0x342   :  { %v1176_v6 = vpop.xlane.xlu1 %1175 }
 0x343   :  { %v1177_v26 = vrot.slane %v1176_v6, 4  ;;  %v1155_v44 = vrot.slane %v1154_v49, 2  ;;  %v1106_v3 = vrot.slane %v1105_v62, 1 }
 0x345   :  { %v1178_v5 = vadd.f32 %v1177_v26, %v1176_v6 }
 0x346   :  { %v1360_v28 = vpop.xlane.xlu1 %1359 }
 0x347   :  { %v1361_v24 = vrot.slane %v1360_v28, 4  ;;  %v1179_v58 = vrot.slane %v1178_v5, 2 }
 0x349   :  { %v1362_v4 = vadd.f32 %v1361_v24, %v1360_v28  ;;  %v1180_v18 = vadd.f32 %v1179_v58, %v1178_v5 }
 0x34b   :  { %v1363_v45 = vrot.slane %v1362_v4, 2  ;;  %v1181_v0 = vrot.slane %v1180_v18, 1 }
 0x34c   :  { %v1412_v39 = vpop.xlane.xlu1 %1411 }
 0x34d   :  { %v1413_v34 = vrot.slane %v1412_v39, 4 }
 0x34f   :  { %v1414_v31 = vadd.f32 %v1413_v34, %v1412_v39 }
 0x350   :  { %v1436_v14 = vpop.xlane.xlu1 %1435 }
 0x351   :  { %v1437_v52 = vrot.slane %v1436_v14, 4 }
 0x353   :  { %v1438_v11 = vadd.f32 %v1437_v52, %v1436_v14 }
 0x381   :  { %v1521_v36 = vpop.f32.mrb[0].mxu1 }
 0x382   :  { %v1522_v60 = vadd.f32 %v1521_v36, %v1451_v37  ;;  %v1663_v33 = vpop.f32.mrb[1].mxu1 }
 0x383   :  { %v1156_v33 = vadd.f32 %v1155_v44, %v1154_v49 }
 0x384   :  { %v1526_v53 = vsel %vm1525_vm5, %v1522_v60, -inf }
 0x385   :  { %1527 = vmax.xlane.f32.xlu0 %v1526_v53  ;;  %v983_v53 = vadd.f32 %v982_v32, %v981_v29  ;;  %v1439_v29 = vrot.slane %v1438_v11, 2 }
 0x387   :  { %v1440_v32 = vadd.f32 %v1439_v29, %v1438_v11 }
 0x389   :  { %964 = vadd.xlane.f32.xlu0 %v963_v30 }
 0x38d   :  { %1079 = vadd.xlane.f32.xlu0 %v1078_v2 }
 0x391   :  { %1121 = vadd.xlane.f32.xlu0 %v1120_v7  ;;  %v1107_v7 = vadd.f32 %v1106_v3, %v1105_v62 }
 0x395   :  { %1163 = vadd.xlane.f32.xlu0 %v1162_v8 }
 0x399   :  { %1338 = vadd.xlane.f32.xlu0 %v1337_v16 }
 0x39d   :  { %1380 = vadd.xlane.f32.xlu0 %v3227_v55  ;;  %v992_v55 = vrot.slane %v991_v56, 2 }
 0x39f   :  { %v993_v42 = vadd.f32 %v992_v55, %v991_v56 }
 0x3a1   :  { %1423 = vadd.xlane.f32.xlu0 %v1422_v59  ;;  %v994_v37 = vrot.slane %v993_v42, 1  ;;  %v1157_v59 = vrot.slane %v1156_v33, 1 }
 0x3a3   :  { %v995_v47 = vadd.f32 %v994_v37, %v993_v42  ;;  %v1158_v23 = vadd.f32 %v1157_v59, %v1156_v33  ;;  %v1441_v33 = vrot.slane %v1440_v32, 1 }
 0x412   :  { %v1528_v38 = vpop.xlane.xlu0 %1527 }
 0x413   :  { %v1529_v17 = vsub.f32 %v1522_v60, %v1528_v38 }
 0x415   :  { %v1530_v22 = vmul.f32 1.442695, %v1529_v17  ;;  %v1415_v17 = vrot.slane %v1414_v31, 2 }
 0x416   :  { %v965_v15 = vpop.xlane.xlu0 %964 }
 0x417   :  { %2046 = vpow2.f32 %v1530_v22  ;;  %v966_v1 = vrot.slane %v965_v15, 4  ;;  %v1364_v22 = vadd.f32 %v1363_v45, %v1362_v4 }
 0x419   :  { %v967_v19 = vadd.f32 %v966_v1, %v965_v15  ;;  %v1365_v42 = vrot.slane %v1364_v22, 1 }
 0x41a   :  { %v1080_v16 = vpop.xlane.xlu0 %1079 }
 0x41b   :  { %v968_v63 = vrot.slane %v967_v19, 2  ;;  %v1081_v54 = vrot.slane %v1080_v16, 4 }
 0x41d   :  { %v1082_v48 = vadd.f32 %v1081_v54, %v1080_v16  ;;  %v969_v50 = vadd.f32 %v968_v63, %v967_v19  ;;  %v1182_v19 = vadd.f32 %v1181_v0, %v1180_v18  ;;  %v1416_v16 = vadd.f32 %v1415_v17, %v1414_v31 }
 0x41e   :  { %v1122_v12 = vpop.xlane.xlu0 %1121 }
 0x41f   :  { %v1083_v36 = vrot.slane %v1082_v48, 2  ;;  %v1123_v43 = vrot.slane %v1122_v12, 4  ;;  %v970_v60 = vrot.slane %v969_v50, 1 }
 0x421   :  { %v3268_v51 = vpop.eup %2046  ;;  %v1124_v30 = vadd.f32 %v1123_v43, %v1122_v12  ;;  %v971_v20 = vadd.f32 %v970_v60, %v969_v50  ;;  %v1084_v2 = vadd.f32 %v1083_v36, %v1082_v48  ;;  %v1366_v48 = vadd.f32 %v1365_v42, %v1364_v22 }
 0x422   :  { %v1532_v21 = vsel %vm1525_vm5, %v3268_v51, 0.0  ;;  %v1164_v9 = vpop.xlane.xlu0 %1163  ;;  %v1417_v50 = vrot.slane %v1416_v16, 1 }
 0x423   :  { %1533 = vadd.xlane.f32.xlu0 %v1532_v21  ;;  %v1125_v57 = vrot.slane %v1124_v30, 2  ;;  %v1165_v8 = vrot.slane %v1164_v9, 4  ;;  %1714 = vpush %v971_v20  ;;  %v1085_v41 = vrot.slane %v1084_v2, 1 }
 0x424   :  { %1716 = vpush %v983_v53  ;;  %v1418_v60 = vadd.f32 %v1417_v50, %v1416_v16  ;;  %v1442_v53 = vadd.f32 %v1441_v33, %v1440_v32 }
 0x425   :  { %v1166_v35 = vadd.f32 %v1165_v8, %v1164_v9  ;;  %1718 = vpush %v995_v47  ;;  %v1086_v25 = vadd.f32 %v1085_v41, %v1084_v2  ;;  %v1126_v46 = vadd.f32 %v1125_v57, %v1124_v30 }
 0x426   :  { %v1339_v6 = vpop.xlane.xlu0 %1338 }
 0x427   :  { %v1167_v27 = vrot.slane %v1166_v35, 2  ;;  %v1340_v56 = vrot.slane %v1339_v6, 4  ;;  %1720 = vpush %v1086_v25  ;;  %v1127_v38 = vrot.slane %v1126_v46, 1 }
 0x428   :  { %1722 = vpush %v1107_v7 }
 0x429   :  { %v1341_v55 = vadd.f32 %v1340_v56, %v1339_v6  ;;  %v1128_v28 = vadd.f32 %v1127_v38, %v1126_v46  ;;  %v1168_v15 = vadd.f32 %v1167_v27, %v1166_v35 }
 0x42a   :  { %v1381_v40 = vpop.xlane.xlu0 %1380 }
 0x42b   :  { %v1342_v1 = vrot.slane %v1341_v55, 2  ;;  %v1382_v49 = vrot.slane %v1381_v40, 4  ;;  %1724 = vpush %v1128_v28  ;;  %v1169_v26 = vrot.slane %v1168_v15, 1 }
 0x42c   :  { %1726 = vpush %v1158_v23 }
 0x42d   :  { %v1383_v62 = vadd.f32 %v1382_v49, %v1381_v40  ;;  %v1170_v63 = vadd.f32 %v1169_v26, %v1168_v15  ;;  %v1343_v54 = vadd.f32 %v1342_v1, %v1341_v55 }
 0x42e   :  { %v1424_v44 = vpop.xlane.xlu0 %1423 }
 0x42f   :  { %v1384_v39 = vrot.slane %v1383_v62, 2  ;;  %v1425_v5 = vrot.slane %v1424_v44, 4  ;;  %1728 = vpush %v1170_v63  ;;  %v1344_v24 = vrot.slane %v1343_v54, 1 }
 0x430   :  { %1730 = vpush %v1182_v19 }
 0x431   :  { %v1426_v37 = vadd.f32 %v1425_v5, %v1424_v44  ;;  %v1345_v12 = vadd.f32 %v1344_v24, %v1343_v54  ;;  %v1385_v3 = vadd.f32 %v1384_v39, %v1383_v62 }
 0x433   :  { %v1427_v36 = vrot.slane %v1426_v37, 2  ;;  %1732 = vpush %v1345_v12  ;;  %v1386_v43 = vrot.slane %v1385_v3, 1 }
 0x434   :  { %1734 = vpush %v1366_v48 }
 0x435   :  { %v1387_v58 = vadd.f32 %v1386_v43, %v1385_v3  ;;  %v1428_v4 = vadd.f32 %v1427_v36, %v1426_v37 }
 0x437   :  { %1736 = vpush %v1387_v58  ;;  %v1429_v34 = vrot.slane %v1428_v4, 1 }
 0x438   :  { %1738 = vpush %v1418_v60 }
 0x439   :  { %v1430_v30 = vadd.f32 %v1429_v34, %v1428_v4 }
 0x43b   :  { %1740 = vpush %v1430_v30 }
 0x43c   :  { %1742 = vpush %v1442_v53 }
 0x454   :  { %s1715_s12 = spop %1714 }
 0x455   :  { %s1717_s10 = spop %1716  ;;  %v973_v14 = vstv %s1715_s12 }
 0x456   :  { %s1719_s25 = spop %1718  ;;  %v998_v20 = vadd.f32 %v973_v14, %v3347_v61  ;;  %v985_v47 = vstv %s1717_s10 }
 0x457   :  { %v997_v2 = vstv %s1719_s25  ;;  %v999_v9 = vadd.f32 %v985_v47, %v3349_v10 }
 0x458   :  { %s1721_s26 = spop %1720  ;;  %v1000_v7 = vadd.f32 %v997_v2, %v3351_v13 }
 0x459   :  { %s1723_s27 = spop %1722  ;;  %v1088_v21 = vstv %s1721_s26 }
 0x45a   :  { %v1131_v57 = vadd.f32 %v1088_v21, %v998_v20  ;;  %v1109_v8 = vstv %s1723_s27 }
 0x45b   :  { %v1132_v45 = vadd.f32 %v1109_v8, %v999_v9 }
 0x45c   :  { %s1725_s28 = spop %1724 }
 0x45d   :  { %s1727_s30 = spop %1726  ;;  %v1130_v41 = vstv %s1725_s28 }
 0x45e   :  { %v1160_v59 = vstv %s1727_s30  ;;  %v1133_v31 = vadd.f32 %v1130_v41, %v1000_v7 }
 0x45f   :  { %v1185_v52 = vadd.f32 %v1160_v59, %v1131_v57 }
 0x460   :  { %s1729_s15 = spop %1728 }
 0x461   :  { %s1731_s16 = spop %1730  ;;  %v1172_v61 = vstv %s1729_s15 }
 0x462   :  { %v1184_v18 = vstv %s1731_s16  ;;  %v1186_v25 = vadd.f32 %v1172_v61, %v1132_v45 }
 0x463   :  { %v1187_v46 = vadd.f32 %v1184_v18, %v1133_v31 }
 0x464   :  { %s1733_s8 = spop %1732 }
 0x465   :  { %v1347_v35 = vstv %s1733_s8  ;;  %s1735_s17 = spop %1734 }
 0x466   :  { %v1390_v6 = vadd.f32 %v1347_v35, %v1185_v52  ;;  %v1368_v10 = vstv %s1735_s17 }
 0x467   :  { %v1391_v27 = vadd.f32 %v1368_v10, %v1186_v25 }
 0x468   :  { %s1737_s18 = spop %1736 }
 0x469   :  { %v1389_v13 = vstv %s1737_s18  ;;  %s1739_s19 = spop %1738 }
 0x46a   :  { %v1420_v56 = vstv %s1739_s19  ;;  %v1392_v38 = vadd.f32 %v1389_v13, %v1187_v46 }
 0x46b   :  { %v1445_v23 = vadd.f32 %v1420_v56, %v1390_v6 }
 0x46c   :  { %s1741_s0 = spop %1740 }
 0x46d   :  { %v1432_v17 = vstv %s1741_s0  ;;  %s1743_s1 = spop %1742  ;;  %v1538_v11 = vsub.f32 -31414.832, %v1445_v23 }
 0x46e   :  { %v1446_v0 = vadd.f32 %v1432_v17, %v1391_v27  ;;  %v1444_v22 = vstv %s1743_s1 }
 0x46f   :  { %v1447_v55 = vadd.f32 %v1444_v22, %v1392_v38 }
 0x470   :  { %v1539_v28 = vmul.f32 0.5, %v1446_v0 }
 0x471   :  { %v1543_v15 = vmul.f32 50.0, %v1447_v55 }
 0x472   :  { %v1540_v40 = vsub.f32 %v1538_v11, %v1539_v28 }
 0x473   :  { %v1544_v1 = vsub.f32 47301.34, %v1543_v15 }
 0x474   :  { %1542 = vst.msk [vmem:[%s3309_s14] sm:$0x1] %vm1541_vm6, %v1540_v40 }
 0x475   :  { %1546 = vst.msk [vmem:[%s3309_s14] sm:$0x1] %vm1545_vm7, %v1544_v1 }
 0x4b0   :  { %v1534_v49 = vpop.xlane.xlu0 %1533 }
 0x4b1   :  { %2048 = vrcp.f32 %v1534_v49 }
 0x4bb   :  { %v2049_v26 = vpop.eup %2048 }
 0x4bc   :  { %v1536_v29 = vmul.f32 %v2049_v26, %v3268_v51 }
 0x4be   :  { %1537 = vst.msk [vmem:[#allocation2] sm:$0x3] %vm1525_vm5, %v1536_v29 }
 0x4bf   :  { %2061 = shalt.err (!%p2058_p5)
}
 0x4c0   :  { %s2062_s14 = scalar_lea.hbm %s3308_s13, 32 }
 0x4c1   :  { %p2063_p6 = scmp.ne.s32.totalorder %s3308_s13, %s2062_s14  ;;  %p2066_p7 = scmp.lt.u32.totalorder %s2062_s14, %s3308_s13 }
 0x4c3   :  { %p2068_p8 = pnand %p2066_p7, %p2063_p6 }
 0x4c5   :  { %2071 = shalt.err (!%p2068_p8)
}
 0x4c6   :  { %1556 = dma.vmem_to_hbm [thread:$0]  %s1554_s6, 32, %s3308_s13, [#allocation3]  }
 0x4c7   :  { %2092 = dma.done.wait [#allocation3], 32  }
 0x4c8   :  { %2093 = vsyncadd [#allocation3], 4294967264 }
 0x4c9   :  { %1564 = vsyncpa [#allocation3], 1 }

</bundles_post_ra>
